<compile_context>
chip_gen: v6e
topology: v6e:2x2x1
jax: 0.10.0
libtpu: 0.0.40
codegen_flags: <defaults>
</compile_context>

<pallas_src>
import jax
import jax.numpy as jnp
import numpy as np
from jax.experimental import pallas as pl
from jax.experimental.pallas import tpu as pltpu


def _round_up(x, m):
    return ((x + m - 1) // m) * m


def gnn_layer2_kernel(cat_ref, nf_ref, dst_ref,
                      wmsg_ref, bmsg_ref, wappn_ref, wapph_ref, bapp_ref,
                      out_ref, acc_ref):
    """One (node_tile, edge_tile) grid step."""
    i = pl.program_id(0)            # node-row tile index (parallel)
    k = pl.program_id(1)            # edge-row tile index (reduction)

    @pl.when(k == 0)
    def _init():
        acc_ref[...] = jnp.zeros_like(acc_ref)

    # --- message: m = relu([h_src | h_edge] @ W_msg^T + b_msg)  (one GEMM) ---
    m = jnp.dot(cat_ref[...], wmsg_ref[...], preferred_element_type=jnp.float32)
    m = jnp.maximum(m + bmsg_ref[...], 0.0)                        # [te, Do]

    # --- adjacency tile built on-chip: A[n, e] = (node_row_n == dst_row_e) ---
    tn = acc_ref.shape[0]
    te = m.shape[0]
    node_rows = jax.lax.broadcasted_iota(jnp.int32, (tn, te), 0) + i * tn
    a_tile = (node_rows == dst_ref[...]).astype(jnp.float32)       # [tn, te]
    # padded edges carry dst = -1, so their (nonzero relu(b_msg)) messages are
    # multiplied by an exactly-zero adjacency column and never contribute.

    # --- aggregate: h_neigh_tile += A_tile @ m -------------------------------
    acc_ref[...] += jnp.dot(a_tile, m, preferred_element_type=jnp.float32)

    # --- apply: out = relu([h | h_neigh] @ W_apply^T + b_apply) --------------
    @pl.when(k == pl.num_programs(1) - 1)
    def _finalize():
        o = jnp.dot(nf_ref[...], wappn_ref[...], preferred_element_type=jnp.float32)
        o = o + jnp.dot(acc_ref[...], wapph_ref[...],
                        preferred_element_type=jnp.float32)
        out_ref[...] = jnp.maximum(o + bapp_ref[...], 0.0)


def gnn_layer2_forward(nfeats, efeats, src, dst, params, *, tn=128, te=512):
    """nfeats: [N, K, Din], efeats: [E, K, De], src/dst: [E] int32."""
    N, K, Din = nfeats.shape
    E, _, De = efeats.shape
    Dout = params["b_msg"].shape[0]

    NR, ER = N * K, E * K                      # flattened row counts
    Np = _round_up(NR, tn)                     # node rows, tile-padded
    Ep = _round_up(ER, te)                     # edge rows, tile-padded
    Dc = _round_up(Din + De, 128)              # message contraction (lane-dense)
    Dn = _round_up(Din, 128)                   # node feature dim (lane-dense)
    Do = _round_up(Dout, 128)                  # output / h_neigh dim (lane-dense)

    f32 = jnp.float32

    # ---- glue in plain JAX: gather, concat, padding, weight split ----------
    src_h = nfeats[src].reshape(ER, Din).astype(f32)               # per-edge src feats
    ef2 = efeats.reshape(ER, De).astype(f32)
    cat_ef = jnp.concatenate([src_h, ef2], axis=1)                 # [ER, Din+De]
    cat_ef = jnp.pad(cat_ef, ((0, Ep - ER), (0, Dc - (Din + De))))

    nf2 = nfeats.reshape(NR, Din).astype(f32)
    nf2 = jnp.pad(nf2, ((0, Np - NR), (0, Dn - Din)))

    # per-edge destination row id (folds the K broadcast axis); pad with -1
    dst_rows = (dst.astype(jnp.int32)[:, None] * K
                + jnp.arange(K, dtype=jnp.int32)[None, :]).reshape(ER)
    dst_rows = jnp.pad(dst_rows, (0, Ep - ER),
                       constant_values=-1).reshape(1, Ep)

    # transposed weights: cat([a, b]) @ W^T == [a|b] @ W^T (message, fused) and
    # a @ W_a^T + b @ W_b^T (apply, split because h_neigh is kernel-internal)
    wmsg = jnp.pad(params["W_msg"].T.astype(f32),
                   ((0, Dc - (Din + De)), (0, Do - Dout)))
    wapp_t = params["W_apply"].T.astype(f32)                       # [Din+Dout, Dout]
    wapp_n = jnp.pad(wapp_t[:Din], ((0, Dn - Din), (0, Do - Dout)))
    wapp_h = jnp.pad(wapp_t[Din:], ((0, Do - Dout), (0, Do - Dout)))
    bmsg = jnp.pad(params["b_msg"].astype(f32), (0, Do - Dout)).reshape(1, Do)
    bapp = jnp.pad(params["b_apply"].astype(f32), (0, Do - Dout)).reshape(1, Do)

    grid = (Np // tn, Ep // te)
    const = lambda i, k: (0, 0)                # weights/biases stay resident

    grid_spec = pltpu.PrefetchScalarGridSpec(
        num_scalar_prefetch=0,
        grid=grid,
        in_specs=[
            pl.BlockSpec((te, Dc), lambda i, k: (k, 0)),   # [h_src | h_edge] edge tile
            pl.BlockSpec((tn, Dn), lambda i, k: (i, 0)),   # node feature tile
            pl.BlockSpec((1, te), lambda i, k: (0, k)),    # dst row ids (edge tile)
            pl.BlockSpec((Dc, Do), const),                 # W_msg^T
            pl.BlockSpec((1, Do), const),                  # b_msg
            pl.BlockSpec((Dn, Do), const),                 # W_apply^T (node half)
            pl.BlockSpec((Do, Do), const),                 # W_apply^T (neigh half)
            pl.BlockSpec((1, Do), const),                  # b_apply
        ],
        out_specs=pl.BlockSpec((tn, Do), lambda i, k: (i, 0)),
        scratch_shapes=[pltpu.VMEM((tn, Do), jnp.float32)],
    )

    out = pl.pallas_call(
        gnn_layer2_kernel,
        out_shape=jax.ShapeDtypeStruct((Np, Do), jnp.float32),
        grid_spec=grid_spec,
        compiler_params=pltpu.CompilerParams(
            dimension_semantics=("parallel", "arbitrary"),
            vmem_limit_bytes=32 * 1024 * 1024),
    )(cat_ef, nf2, dst_rows, wmsg, bmsg, wapp_n, wapp_h, bapp)

    return out[:NR, :Dout].reshape(N, K, Dout)


def ref_forward(nfeats, efeats, src, dst, params):
    """Pure-JAX reference mirroring the PyTorch/DGL forward."""
    N = nfeats.shape[0]
    src_h = nfeats[src]
    cat = jnp.concatenate([src_h, efeats], axis=2)
    m = jax.nn.relu(cat @ params["W_msg"].T + params["b_msg"])
    h_neigh = jax.ops.segment_sum(m, dst, num_segments=N)
    cat2 = jnp.concatenate([nfeats, h_neigh], axis=2)
    return jax.nn.relu(cat2 @ params["W_apply"].T + params["b_apply"])


def init_params(key, ndim_in, edims, ndim_out):
    """Deterministic nn.Linear-style init: U(-1/sqrt(fan_in), 1/sqrt(fan_in))."""
    k1, k2, k3, k4 = jax.random.split(key, 4)
    fan_msg = ndim_in + edims
    fan_app = ndim_in + ndim_out
    bm = 1.0 / np.sqrt(fan_msg)
    ba = 1.0 / np.sqrt(fan_app)
    return {
        "W_msg": jax.random.uniform(k1, (ndim_out, fan_msg), jnp.float32, -bm, bm),
        "b_msg": jax.random.uniform(k2, (ndim_out,), jnp.float32, -bm, bm),
        "W_apply": jax.random.uniform(k3, (ndim_out, fan_app), jnp.float32, -ba, ba),
        "b_apply": jax.random.uniform(k4, (ndim_out,), jnp.float32, -ba, ba),
    }


if __name__ == "__main__":
    key = jax.random.PRNGKey(0)
    kp, kn, ke, ks, kd = jax.random.split(key, 5)

    N, E, K = 8, 16, 1
    ndim_in, edims, ndim_out = 16, 16, 16

    params = init_params(kp, ndim_in, edims, ndim_out)
    nfeats = jax.random.normal(kn, (N, K, ndim_in), jnp.float32)
    efeats = jax.random.normal(ke, (E, K, edims), jnp.float32)
    src = jax.random.randint(ks, (E,), 0, N, dtype=jnp.int32)
    dst = jax.random.randint(kd, (E,), 0, N, dtype=jnp.int32)

    out = gnn_layer2_forward(nfeats, efeats, src, dst, params)
    out = jax.block_until_ready(out)

    ref = ref_forward(nfeats, efeats, src, dst, params)
    np.testing.assert_allclose(np.asarray(out), np.asarray(ref), rtol=1e-5, atol=1e-5)

    print("KERNEL_OK")
</pallas_src>

<mosaic_0001>
module attributes {stable_mosaic.version = 11 : i64} {
  func.func @gnn_layer2_kernel(%arg0: i32, %arg1: i32, %arg2: memref<512x128xf32, #tpu.memory_space<vmem>>, %arg3: memref<128x128xf32, #tpu.memory_space<vmem>>, %arg4: memref<1x512xi32, #tpu.memory_space<vmem>>, %arg5: memref<128x128xf32, #tpu.memory_space<vmem>>, %arg6: memref<1x128xf32, #tpu.memory_space<vmem>>, %arg7: memref<128x128xf32, #tpu.memory_space<vmem>>, %arg8: memref<128x128xf32, #tpu.memory_space<vmem>>, %arg9: memref<1x128xf32, #tpu.memory_space<vmem>>, %arg10: memref<128x128xf32, #tpu.memory_space<vmem>>, %arg11: memref<128x128xf32, #tpu.memory_space<vmem>>) attributes {dimension_semantics = [#tpu.dimension_semantics<parallel>, #tpu.dimension_semantics<arbitrary>], iteration_bounds = array<i64: 1, 1>, scalar_prefetch = 0 : i64, scratch_operands = 1 : i64, tpu.core_type = #tpu.core_type<tc>, window_params = [{transform_indices = @transform_0, window_bounds = array<i64: 512, 128>}, {transform_indices = @transform_1, window_bounds = array<i64: 128, 128>}, {transform_indices = @transform_2, window_bounds = array<i64: 1, 512>}, {pipeline_mode = #tpu.pipeline_mode<synchronous>, transform_indices = @transform_3, window_bounds = array<i64: 128, 128>}, {pipeline_mode = #tpu.pipeline_mode<synchronous>, transform_indices = @transform_4, window_bounds = array<i64: 1, 128>}, {pipeline_mode = #tpu.pipeline_mode<synchronous>, transform_indices = @transform_5, window_bounds = array<i64: 128, 128>}, {pipeline_mode = #tpu.pipeline_mode<synchronous>, transform_indices = @transform_6, window_bounds = array<i64: 128, 128>}, {pipeline_mode = #tpu.pipeline_mode<synchronous>, transform_indices = @transform_7, window_bounds = array<i64: 1, 128>}, {transform_indices = @transform_8, window_bounds = array<i64: 128, 128>}]} {
    %c0_i32 = arith.constant 0 : i32
    %0 = arith.cmpi eq, %arg1, %c0_i32 : i32
    %1 = arith.extui %0 : i1 to i32
    %c0_i32_0 = arith.constant 0 : i32
    %2 = arith.cmpi ne, %1, %c0_i32_0 : i32
    scf.if %2 {
      %cst_16 = arith.constant 0.000000e+00 : f32
      %27 = vector.broadcast %cst_16 : f32 to vector<128x128xf32>
      %c0_17 = arith.constant 0 : index
      %c0_18 = arith.constant 0 : index
      %28 = vector.load %arg11[%c0_17, %c0_18] : memref<128x128xf32, #tpu.memory_space<vmem>>, vector<128x128xf32>
      tpu.vector_store %arg11[%c0_17, %c0_18], %27 {strides = array<i32>} : memref<128x128xf32, #tpu.memory_space<vmem>>, vector<128x128xf32>,
    } else {
    }
    %c0 = arith.constant 0 : index
    %c0_1 = arith.constant 0 : index
    %3 = vector.load %arg2[%c0, %c0_1] : memref<512x128xf32, #tpu.memory_space<vmem>>, vector<512x128xf32>
    %c0_2 = arith.constant 0 : index
    %c0_3 = arith.constant 0 : index
    %4 = vector.load %arg5[%c0_2, %c0_3] : memref<128x128xf32, #tpu.memory_space<vmem>>, vector<128x128xf32>
    %cst = arith.constant dense<0.000000e+00> : vector<512x128xf32>
    %5 = tpu.matmul %3, %4, %cst {dimension_numbers = #tpu.dot_dimension_numbers<[1], [0], [0], [1], [0, 0, 1, 1], [], []>} : vector<512x128xf32>, vector<128x128xf32>, vector<512x128xf32> -> vector<512x128xf32>
    %c0_4 = arith.constant 0 : index
    %c0_5 = arith.constant 0 : index
    %6 = vector.load %arg6[%c0_4, %c0_5] : memref<1x128xf32, #tpu.memory_space<vmem>>, vector<1x128xf32>
    %7 = vector.broadcast %6 : vector<1x128xf32> to vector<512x128xf32>
    %8 = arith.addf %5, %7 : vector<512x128xf32>
    %cst_6 = arith.constant 0.000000e+00 : f32
    %9 = vector.broadcast %cst_6 : f32 to vector<512x128xf32>
    %10 = arith.maximumf %8, %9 : vector<512x128xf32>
    %11 = tpu.iota {dimensions = array<i32: 0>} : vector<128x512xi32>
    %c128_i32 = arith.constant 128 : i32
    %12 = arith.muli %arg0, %c128_i32 : i32
    %13 = vector.broadcast %12 : i32 to vector<128x512xi32>
    %14 = arith.addi %11, %13 : vector<128x512xi32>
    %c0_7 = arith.constant 0 : index
    %c0_8 = arith.constant 0 : index
    %15 = vector.load %arg4[%c0_7, %c0_8] : memref<1x512xi32, #tpu.memory_space<vmem>>, vector<1x512xi32>
    %16 = vector.broadcast %15 : vector<1x512xi32> to vector<128x512xi32>
    %17 = arith.cmpi eq, %14, %16 : vector<128x512xi32>
    %18 = arith.extui %17 : vector<128x512xi1> to vector<128x512xi32>
    %19 = arith.sitofp %18 : vector<128x512xi32> to vector<128x512xf32>
    %c0_9 = arith.constant 0 : index
    %c0_10 = arith.constant 0 : index
    %20 = vector.load %arg11[%c0_9, %c0_10] : memref<128x128xf32, #tpu.memory_space<vmem>>, vector<128x128xf32>
    %cst_11 = arith.constant dense<0.000000e+00> : vector<128x128xf32>
    %21 = tpu.matmul %19, %10, %cst_11 {dimension_numbers = #tpu.dot_dimension_numbers<[1], [0], [0], [1], [0, 0, 1, 1], [], []>} : vector<128x512xf32>, vector<512x128xf32>, vector<128x128xf32> -> vector<128x128xf32>
    %22 = arith.addf %20, %21 : vector<128x128xf32>
    %c0_12 = arith.constant 0 : index
    %c0_13 = arith.constant 0 : index
    %23 = vector.load %arg11[%c0_12, %c0_13] : memref<128x128xf32, #tpu.memory_space<vmem>>, vector<128x128xf32>
    tpu.vector_store %arg11[%c0_12, %c0_13], %22 {strides = array<i32>} : memref<128x128xf32, #tpu.memory_space<vmem>>, vector<128x128xf32>,
    %c0_i32_14 = arith.constant 0 : i32
    %24 = arith.cmpi eq, %arg1, %c0_i32_14 : i32
    %25 = arith.extui %24 : i1 to i32
    %c0_i32_15 = arith.constant 0 : i32
    %26 = arith.cmpi ne, %25, %c0_i32_15 : i32
    scf.if %26 {
      %c0_16 = arith.constant 0 : index
      %c0_17 = arith.constant 0 : index
      %27 = vector.load %arg3[%c0_16, %c0_17] : memref<128x128xf32, #tpu.memory_space<vmem>>, vector<128x128xf32>
      %c0_18 = arith.constant 0 : index
      %c0_19 = arith.constant 0 : index
      %28 = vector.load %arg7[%c0_18, %c0_19] : memref<128x128xf32, #tpu.memory_space<vmem>>, vector<128x128xf32>
      %cst_20 = arith.constant dense<0.000000e+00> : vector<128x128xf32>
      %29 = tpu.matmul %27, %28, %cst_20 {dimension_numbers = #tpu.dot_dimension_numbers<[1], [0], [0], [1], [0, 0, 1, 1], [], []>} : vector<128x128xf32>, vector<128x128xf32>, vector<128x128xf32> -> vector<128x128xf32>
      %c0_21 = arith.constant 0 : index
      %c0_22 = arith.constant 0 : index
      %30 = vector.load %arg11[%c0_21, %c0_22] : memref<128x128xf32, #tpu.memory_space<vmem>>, vector<128x128xf32>
      %c0_23 = arith.constant 0 : index
      %c0_24 = arith.constant 0 : index
      %31 = vector.load %arg8[%c0_23, %c0_24] : memref<128x128xf32, #tpu.memory_space<vmem>>, vector<128x128xf32>
      %cst_25 = arith.constant dense<0.000000e+00> : vector<128x128xf32>
      %32 = tpu.matmul %30, %31, %cst_25 {dimension_numbers = #tpu.dot_dimension_numbers<[1], [0], [0], [1], [0, 0, 1, 1], [], []>} : vector<128x128xf32>, vector<128x128xf32>, vector<128x128xf32> -> vector<128x128xf32>
      %33 = arith.addf %29, %32 : vector<128x128xf32>
      %c0_26 = arith.constant 0 : index
      %c0_27 = arith.constant 0 : index
      %34 = vector.load %arg9[%c0_26, %c0_27] : memref<1x128xf32, #tpu.memory_space<vmem>>, vector<1x128xf32>
      %35 = vector.broadcast %34 : vector<1x128xf32> to vector<128x128xf32>
      %36 = arith.addf %33, %35 : vector<128x128xf32>
      %cst_28 = arith.constant 0.000000e+00 : f32
      %37 = vector.broadcast %cst_28 : f32 to vector<128x128xf32>
      %38 = arith.maximumf %36, %37 : vector<128x128xf32>
      %c0_29 = arith.constant 0 : index
      %c0_30 = arith.constant 0 : index
      %39 = vector.load %arg10[%c0_29, %c0_30] : memref<128x128xf32, #tpu.memory_space<vmem>>, vector<128x128xf32>
      tpu.vector_store %arg10[%c0_29, %c0_30], %38 {strides = array<i32>} : memref<128x128xf32, #tpu.memory_space<vmem>>, vector<128x128xf32>,
    } else {
    }
    return
  }
  func.func @transform_0(%arg0: i32, %arg1: i32) -> (i32, i32) {
    %c0_i32 = arith.constant 0 : i32
    %c0_i32_0 = arith.constant 0 : i32
    return %arg1, %c0_i32 : i32, i32
  }
  func.func @transform_1(%arg0: i32, %arg1: i32) -> (i32, i32) {
    %c0_i32 = arith.constant 0 : i32
    %c0_i32_0 = arith.constant 0 : i32
    return %arg0, %c0_i32 : i32, i32
  }
  func.func @transform_2(%arg0: i32, %arg1: i32) -> (i32, i32) {
    %c0_i32 = arith.constant 0 : i32
    %c0_i32_0 = arith.constant 0 : i32
    return %c0_i32, %arg1 : i32, i32
  }
  func.func @transform_3(%arg0: i32, %arg1: i32) -> (i32, i32) {
    %c0_i32 = arith.constant 0 : i32
    %c0_i32_0 = arith.constant 0 : i32
    %c0_i32_1 = arith.constant 0 : i32
    return %c0_i32, %c0_i32_0 : i32, i32
  }
  func.func @transform_4(%arg0: i32, %arg1: i32) -> (i32, i32) {
    %c0_i32 = arith.constant 0 : i32
    %c0_i32_0 = arith.constant 0 : i32
    %c0_i32_1 = arith.constant 0 : i32
    return %c0_i32, %c0_i32_0 : i32, i32
  }
  func.func @transform_5(%arg0: i32, %arg1: i32) -> (i32, i32) {
    %c0_i32 = arith.constant 0 : i32
    %c0_i32_0 = arith.constant 0 : i32
    %c0_i32_1 = arith.constant 0 : i32
    return %c0_i32, %c0_i32_0 : i32, i32
  }
  func.func @transform_6(%arg0: i32, %arg1: i32) -> (i32, i32) {
    %c0_i32 = arith.constant 0 : i32
    %c0_i32_0 = arith.constant 0 : i32
    %c0_i32_1 = arith.constant 0 : i32
    return %c0_i32, %c0_i32_0 : i32, i32
  }
  func.func @transform_7(%arg0: i32, %arg1: i32) -> (i32, i32) {
    %c0_i32 = arith.constant 0 : i32
    %c0_i32_0 = arith.constant 0 : i32
    %c0_i32_1 = arith.constant 0 : i32
    return %c0_i32, %c0_i32_0 : i32, i32
  }
  func.func @transform_8(%arg0: i32, %arg1: i32) -> (i32, i32) {
    %c0_i32 = arith.constant 0 : i32
    %c0_i32_0 = arith.constant 0 : i32
    return %arg0, %c0_i32 : i32, i32
  }
}

</mosaic_0001>

<bundles_post_ra>
// kernel: tpu_custom_call.1
= control target key start
LH: loop header
LB: loop body
LE: loop exit
PB: predicated region body
PF: predicated region fallthrough
CT: control target
= control target key end

     0   :  { %13 = vsyncpa [#allocation4], 0  ;;  %s3099_s0 = inlined_call_operand.hbm [shape: f32[512,128], index: 0, kind: input, shape index: {}]   ;;  %s3100_s1 = inlined_call_operand.hbm [shape: f32[128,128], index: 1, kind: input, shape index: {}]   ;;  %s3101_s2 = inlined_call_operand.hbm [shape: s32[1,512], index: 2, kind: input, shape index: {}]   ;;  %s3102_s3 = inlined_call_operand.hbm [shape: f32[128,128], index: 3, kind: input, shape index: {}]   ;;  %s3103_s4 = inlined_call_operand.vmem [shape: f32[1,128], index: 4, kind: input, shape index: {}]   ;;  %s3104_s5 = inlined_call_operand.hbm [shape: f32[128,128], index: 5, kind: input, shape index: {}]   ;;  %s3105_s6 = inlined_call_operand.hbm [shape: f32[128,128], index: 6, kind: input, shape index: {}]   ;;  %s3106_s7 = inlined_call_operand.vmem [shape: f32[1,128], index: 7, kind: input, shape index: {}]   ;;  %s3107_s8 = inlined_call_operand.hbm [shape: f32[128,128], index: 8, kind: output, shape index: {}]  }
   0x1   :  { %14 = vsyncpa [#allocation7], 0 }
   0x2   :  { %15 = vsyncpa [#allocation10], 0 }
   0x3   :  { %16 = vsyncpa [#allocation13], 0 }
   0x4   :  { %17 = vsyncpa [#allocation5], 0  ;;  %s2514_s27 = smov [#allocation6]   ;;  %s2515_s29 = smov [#allocation9]  }
   0x5   :  { %s35_s28 = sshll.u32 %s2514_s27, 4  ;;  %s57_s30 = sshll.u32 %s2515_s29, 4  ;;  %s36_s28 = int_to_ptr.vmem [resolvable:$true] %s35_s28  ;;  %s58_s30 = int_to_ptr.vmem [resolvable:$true] %s57_s30 }
   0x6   :  { %s2372_s9 = scalar_lea.vmem %s36_s28, 2048  ;;  %p2377_p1 = scmp.lt.s32.totalorder %s36_s28, %s36_s28 }
   0x7   :  { %p2373_p0 = scmp.ne.s32.totalorder %s36_s28, %s2372_s9  ;;  %p2378_p2 = scmp.lt.s32.totalorder %s2372_s9, %s2372_s9 }
   0x9   :  { %p2379_p3 = por %p2378_p2, %p2377_p1 }
   0xb   :  { %p2380_p4 = pnand %p2379_p3, %p2373_p0 }
   0xd   :  { %2383 = shalt.err (!%p2380_p4)
}
   0xe   :  { %s2516_s10 = smov 128   ;;  %s2517_s11 = smov 8  }
   0xf   :  { %41 = dma.hbm_to_vmem [thread:$0]  %s3100_s1, 2048, %s36_s28, [#allocation7], %s2516_s10, %s2516_s10, %s2517_s11  }
  0x10   :  { %s2392_s14 = scalar_lea.vmem %s58_s30, 2048  ;;  %p2397_p6 = scmp.lt.s32.totalorder %s58_s30, %s58_s30 }
  0x11   :  { %p2393_p5 = scmp.ne.s32.totalorder %s58_s30, %s2392_s14  ;;  %p2398_p7 = scmp.lt.s32.totalorder %s2392_s14, %s2392_s14 }
  0x13   :  { %p2399_p8 = por %p2398_p7, %p2397_p6 }
  0x15   :  { %p2400_p9 = pnand %p2399_p8, %p2393_p5 }
  0x17   :  { %2403 = shalt.err (!%p2400_p9)
}
  0x18   :  { %63 = dma.hbm_to_vmem [thread:$0]  %s3102_s3, 2048, %s58_s30, [#allocation10], %s2516_s10, %s2516_s10, %s2517_s11  }
  0x19   :  { %s2518_s17 = smov [#allocation3]   ;;  %s2519_s19 = smov [#allocation8]  }
  0x1a   :  { %s23_s18 = sshll.u32 %s2518_s17, 4  ;;  %s48_s20 = sshll.u32 %s2519_s19, 4  ;;  %s24_s18 = int_to_ptr.vmem [resolvable:$true] %s23_s18  ;;  %s49_s20 = int_to_ptr.vmem [resolvable:$true] %s48_s20 }
  0x1b   :  { %s2412_s1 = scalar_lea.vmem %s24_s18, 8192  ;;  %p2417_p11 = scmp.lt.s32.totalorder %s24_s18, %s24_s18 }
  0x1c   :  { %p2413_p10 = scmp.ne.s32.totalorder %s24_s18, %s2412_s1  ;;  %p2418_p12 = scmp.lt.s32.totalorder %s2412_s1, %s2412_s1 }
  0x1e   :  { %p2419_p13 = por %p2418_p12, %p2417_p11 }
  0x20   :  { %p2420_p0 = pnand %p2419_p13, %p2413_p10 }
  0x22   :  { %2423 = shalt.err (!%p2420_p0)
}
  0x23   :  { %29 = dma.hbm_to_vmem [thread:$0]  %s3099_s0, 8192, %s24_s18, [#allocation4], %s2516_s10, %s2516_s10, %s2517_s11  }
  0x24   :  { %s2432_s3 = scalar_lea.vmem %s49_s20, 64  ;;  %p2437_p2 = scmp.lt.s32.totalorder %s49_s20, %s49_s20 }
  0x25   :  { %p2433_p1 = scmp.ne.s32.totalorder %s49_s20, %s2432_s3  ;;  %p2438_p3 = scmp.lt.s32.totalorder %s2432_s3, %s2432_s3 }
  0x27   :  { %p2439_p4 = por %p2438_p3, %p2437_p2 }
  0x29   :  { %p2440_p5 = pnand %p2439_p4, %p2433_p1 }
  0x2b   :  { %2443 = shalt.err (!%p2440_p5)
}
  0x2c   :  { %51 = dma.hbm_to_vmem [thread:$0]  %s3101_s2, 64, %s49_s20, [#allocation7]  }
  0x2d   :  { %s2520_s25 = smov [#allocation11]   ;;  %s2521_s27 = smov [#allocation12]  }
  0x2e   :  { %s71_s26 = sshll.u32 %s2520_s25, 4  ;;  %s83_s28 = sshll.u32 %s2521_s27, 4  ;;  %s72_s26 = int_to_ptr.vmem [resolvable:$true] %s71_s26  ;;  %s84_s28 = int_to_ptr.vmem [resolvable:$true] %s83_s28 }
  0x2f   :  { %s2452_s29 = scalar_lea.vmem %s72_s26, 2048  ;;  %p2457_p7 = scmp.lt.s32.totalorder %s72_s26, %s72_s26 }
  0x30   :  { %p2453_p6 = scmp.ne.s32.totalorder %s72_s26, %s2452_s29  ;;  %p2458_p8 = scmp.lt.s32.totalorder %s2452_s29, %s2452_s29 }
  0x32   :  { %p2459_p9 = por %p2458_p8, %p2457_p7 }
  0x34   :  { %p2460_p10 = pnand %p2459_p9, %p2453_p6 }
  0x36   :  { %2463 = shalt.err (!%p2460_p10)
}
  0x37   :  { %77 = dma.hbm_to_vmem [thread:$0]  %s3104_s5, 2048, %s72_s26, [#allocation10], %s2516_s10, %s2516_s10, %s2517_s11  }
  0x38   :  { %s2472_s2 = scalar_lea.vmem %s84_s28, 2048  ;;  %p2477_p12 = scmp.lt.s32.totalorder %s84_s28, %s84_s28 }
  0x39   :  { %p2473_p11 = scmp.ne.s32.totalorder %s84_s28, %s2472_s2  ;;  %p2478_p13 = scmp.lt.s32.totalorder %s2472_s2, %s2472_s2 }
  0x3b   :  { %p2479_p0 = por %p2478_p13, %p2477_p12 }
  0x3d   :  { %p2480_p1 = pnand %p2479_p0, %p2473_p11 }
  0x3f   :  { %2483 = shalt.err (!%p2480_p1)
}
  0x40   :  { %89 = dma.hbm_to_vmem [thread:$0]  %s3105_s6, 2048, %s84_s28, [#allocation13], %s2516_s10, %s2516_s10, %s2517_s11  }
  0x41   :  { %2504 = dma.done.wait [#allocation4], 8192  }
  0x42   :  { %2505 = vsyncadd [#allocation4], 4294959104 }
  0x43   :  { %2506 = dma.done.wait [#allocation7], 2112  }
  0x44   :  { %2507 = vsyncadd [#allocation7], 4294965184 }
  0x45   :  { %2508 = dma.done.wait [#allocation10], 4096  }
  0x46   :  { %2509 = vsyncadd [#allocation10], 4294963200 }
  0x47   :  { %2510 = dma.done.wait [#allocation13], 2048  }
  0x48   :  { %2511 = vsyncadd [#allocation13], 4294965248  ;;  %v209_v0 = vld [vmem:[#allocation9 + $0x78] sm:$0xff]  ;;  %v208_v1 = vld [vmem:[#allocation9 + $0x70] sm:$0xff] }
  0x49   :  { %2114 = vmatprep.subr.mxu0 %v209_v0  ;;  %v207_v2 = vld [vmem:[#allocation9 + $0x68] sm:$0xff]  ;;  %v206_v3 = vld [vmem:[#allocation9 + $0x60] sm:$0xff]  ;;  %v205_v5 = vld [vmem:[#allocation9 + $0x58] sm:$0xff] }
  0x4a   :  { %2115 = vmatpush3.msra.mxu0 %v209_v0  ;;  %v130_v4 = vld [vmem:[#allocation3] sm:$0xff]  ;;  %v204_v6 = vld [vmem:[#allocation9 + $0x50] sm:$0xff]  ;;  %v203_v7 = vld [vmem:[#allocation9 + $0x48] sm:$0xff] }
  0x4b   :  { %2116 = vmatprep.subr.mxu0 %v208_v1  ;;  %2146 = vmatprep.mubr.f32.mxu0 %v130_v4  ;;  %v202_v8 = vld [vmem:[#allocation9 + $0x40] sm:$0xff]  ;;  %v201_v9 = vld [vmem:[#allocation9 + $0x38] sm:$0xff]  ;;  %v200_v10 = vld [vmem:[#allocation9 + $0x30] sm:$0xff] }
  0x4c   :  { %2117 = vmatpush3.msra.mxu0 %v208_v1  ;;  %v199_v11 = vld [vmem:[#allocation9 + $0x28] sm:$0xff]  ;;  %v198_v12 = vld [vmem:[#allocation9 + $0x20] sm:$0xff]  ;;  %v197_v13 = vld [vmem:[#allocation9 + $0x18] sm:$0xff] }
  0x4d   :  { %2118 = vmatprep.subr.mxu0 %v207_v2  ;;  %v196_v14 = vld [vmem:[#allocation9 + $0x10] sm:$0xff]  ;;  %v195_v15 = vld [vmem:[#allocation9 + $0x8] sm:$0xff]  ;;  %v194_v16 = vld [vmem:[#allocation9] sm:$0xff] }
  0x4e   :  { %2119 = vmatpush3.msra.mxu0 %v207_v2  ;;  %v131_v17 = vld [vmem:[#allocation3 + $0x8] sm:$0xff]  ;;  %v132_v18 = vld [vmem:[#allocation3 + $0x10] sm:$0xff]  ;;  %v133_v19 = vld [vmem:[#allocation3 + $0x18] sm:$0xff] }
  0x4f   :  { %2120 = vmatprep.subr.mxu0 %v206_v3  ;;  %v134_v20 = vld [vmem:[#allocation3 + $0x20] sm:$0xff]  ;;  %v135_v21 = vld [vmem:[#allocation3 + $0x28] sm:$0xff]  ;;  %v136_v22 = vld [vmem:[#allocation3 + $0x30] sm:$0xff] }
  0x50   :  { %2121 = vmatpush3.msra.mxu0 %v206_v3  ;;  %v137_v23 = vld [vmem:[#allocation3 + $0x38] sm:$0xff]  ;;  %v138_v24 = vld [vmem:[#allocation3 + $0x40] sm:$0xff]  ;;  %v139_v25 = vld [vmem:[#allocation3 + $0x48] sm:$0xff] }
  0x51   :  { %2122 = vmatprep.subr.mxu0 %v205_v5  ;;  %v140_v26 = vld [vmem:[#allocation3 + $0x50] sm:$0xff]  ;;  %v141_v27 = vld [vmem:[#allocation3 + $0x58] sm:$0xff]  ;;  %v142_v28 = vld [vmem:[#allocation3 + $0x60] sm:$0xff] }
  0x52   :  { %2123 = vmatpush3.msra.mxu0 %v205_v5  ;;  %v143_v29 = vld [vmem:[#allocation3 + $0x68] sm:$0xff]  ;;  %v144_v30 = vld [vmem:[#allocation3 + $0x70] sm:$0xff]  ;;  %v145_v31 = vld [vmem:[#allocation3 + $0x78] sm:$0xff] }
  0x53   :  { %2124 = vmatprep.subr.mxu0 %v204_v6  ;;  %v146_v32 = vld [vmem:[#allocation3 + $0x80] sm:$0xff]  ;;  %v147_v33 = vld [vmem:[#allocation3 + $0x88] sm:$0xff]  ;;  %v148_v34 = vld [vmem:[#allocation3 + $0x90] sm:$0xff] }
  0x54   :  { %2125 = vmatpush3.msra.mxu0 %v204_v6  ;;  %v149_v35 = vld [vmem:[#allocation3 + $0x98] sm:$0xff]  ;;  %v150_v36 = vld [vmem:[#allocation3 + $0xa0] sm:$0xff]  ;;  %v151_v37 = vld [vmem:[#allocation3 + $0xa8] sm:$0xff] }
  0x55   :  { %2126 = vmatprep.subr.mxu0 %v203_v7  ;;  %v152_v38 = vld [vmem:[#allocation3 + $0xb0] sm:$0xff]  ;;  %v153_v39 = vld [vmem:[#allocation3 + $0xb8] sm:$0xff]  ;;  %v154_v40 = vld [vmem:[#allocation3 + $0xc0] sm:$0xff] }
  0x56   :  { %2127 = vmatpush3.msra.mxu0 %v203_v7  ;;  %v155_v41 = vld [vmem:[#allocation3 + $0xc8] sm:$0xff]  ;;  %v156_v42 = vld [vmem:[#allocation3 + $0xd0] sm:$0xff]  ;;  %v157_v43 = vld [vmem:[#allocation3 + $0xd8] sm:$0xff] }
  0x57   :  { %2128 = vmatprep.subr.mxu0 %v202_v8  ;;  %v158_v44 = vld [vmem:[#allocation3 + $0xe0] sm:$0xff]  ;;  %v159_v45 = vld [vmem:[#allocation3 + $0xe8] sm:$0xff]  ;;  %v160_v46 = vld [vmem:[#allocation3 + $0xf0] sm:$0xff] }
  0x58   :  { %2129 = vmatpush3.msra.mxu0 %v202_v8  ;;  %v161_v47 = vld [vmem:[#allocation3 + $0xf8] sm:$0xff]  ;;  %v162_v48 = vld [vmem:[#allocation3 + $0x100] sm:$0xff]  ;;  %v163_v49 = vld [vmem:[#allocation3 + $0x108] sm:$0xff] }
  0x59   :  { %2130 = vmatprep.subr.mxu0 %v201_v9  ;;  %v164_v50 = vld [vmem:[#allocation3 + $0x110] sm:$0xff]  ;;  %v165_v51 = vld [vmem:[#allocation3 + $0x118] sm:$0xff]  ;;  %v166_v52 = vld [vmem:[#allocation3 + $0x120] sm:$0xff] }
  0x5a   :  { %2131 = vmatpush3.msra.mxu0 %v201_v9  ;;  %v167_v53 = vld [vmem:[#allocation3 + $0x128] sm:$0xff]  ;;  %v168_v54 = vld [vmem:[#allocation3 + $0x130] sm:$0xff]  ;;  %v169_v55 = vld [vmem:[#allocation3 + $0x138] sm:$0xff] }
  0x5b   :  { %2132 = vmatprep.subr.mxu0 %v200_v10  ;;  %v170_v56 = vld [vmem:[#allocation3 + $0x140] sm:$0xff]  ;;  %v171_v57 = vld [vmem:[#allocation3 + $0x148] sm:$0xff]  ;;  %v172_v58 = vld [vmem:[#allocation3 + $0x150] sm:$0xff] }
  0x5c   :  { %2133 = vmatpush3.msra.mxu0 %v200_v10  ;;  %v173_v59 = vld [vmem:[#allocation3 + $0x158] sm:$0xff]  ;;  %v174_v60 = vld [vmem:[#allocation3 + $0x160] sm:$0xff]  ;;  %v175_v61 = vld [vmem:[#allocation3 + $0x168] sm:$0xff] }
  0x5d   :  { %2134 = vmatprep.subr.mxu0 %v199_v11  ;;  %v176_v62 = vld [vmem:[#allocation3 + $0x170] sm:$0xff]  ;;  %v177_v63 = vld [vmem:[#allocation3 + $0x178] sm:$0xff]  ;;  %v178_v0 = vld [vmem:[#allocation3 + $0x180] sm:$0xff] }
  0x5e   :  { %2135 = vmatpush3.msra.mxu0 %v199_v11  ;;  %v179_v1 = vld [vmem:[#allocation3 + $0x188] sm:$0xff]  ;;  %v180_v2 = vld [vmem:[#allocation3 + $0x190] sm:$0xff]  ;;  %v181_v3 = vld [vmem:[#allocation3 + $0x198] sm:$0xff] }
  0x5f   :  { %2136 = vmatprep.subr.mxu0 %v198_v12  ;;  %v182_v4 = vld [vmem:[#allocation3 + $0x1a0] sm:$0xff]  ;;  %v183_v5 = vld [vmem:[#allocation3 + $0x1a8] sm:$0xff]  ;;  %v184_v6 = vld [vmem:[#allocation3 + $0x1b0] sm:$0xff] }
  0x60   :  { %2137 = vmatpush3.msra.mxu0 %v198_v12  ;;  %v185_v7 = vld [vmem:[#allocation3 + $0x1b8] sm:$0xff]  ;;  %v186_v8 = vld [vmem:[#allocation3 + $0x1c0] sm:$0xff]  ;;  %v187_v9 = vld [vmem:[#allocation3 + $0x1c8] sm:$0xff] }
  0x61   :  { %2138 = vmatprep.subr.mxu0 %v197_v13  ;;  %v188_v10 = vld [vmem:[#allocation3 + $0x1d0] sm:$0xff]  ;;  %v189_v11 = vld [vmem:[#allocation3 + $0x1d8] sm:$0xff]  ;;  %v190_v12 = vld [vmem:[#allocation3 + $0x1e0] sm:$0xff] }
  0x62   :  { %2139 = vmatpush3.msra.mxu0 %v197_v13  ;;  %v191_v13 = vld [vmem:[#allocation3 + $0x1e8] sm:$0xff] }
  0x63   :  { %2140 = vmatprep.subr.mxu0 %v196_v14 }
  0x64   :  { %2141 = vmatpush3.msra.mxu0 %v196_v14  ;;  %v192_v14 = vld [vmem:[#allocation3 + $0x1f0] sm:$0xff] }
  0x65   :  { %2142 = vmatprep.subr.mxu0 %v195_v15 }
  0x66   :  { %2143 = vmatpush3.msra.mxu0 %v195_v15  ;;  %v193_v15 = vld [vmem:[#allocation3 + $0x1f8] sm:$0xff] }
  0x67   :  { %2144 = vmatprep.subr.mxu0 %v194_v16 }
  0x68   :  { %2145 = vmatpush3.msra.mxu0 %v194_v16  ;;  %v666_v16 = vlaneseq }
  0x69   :  { %2147 = vmatmul.mubr.f32.vlgmr.msra.gmra.mxu0 %v131_v17 }
  0x6a   :  { %2149 = vmatprep.mubr.f32.mxu0 %v132_v18  ;;  %v2602_v17 = vshrl.u32 %v666_v16, 7 }
  0x6c   :  { %v708_v18 = vsub.s32 1, %v2602_v17 }
  0x6d   :  { %2150 = vmatmul.mubr.f32.gmra.mxu0 %v133_v19  ;;  %v2605_v19 = vld [vmem:[#allocation8] sm:$0xf] }
  0x6e   :  { %2152 = vmatprep.mubr.f32.mxu0 %v134_v20  ;;  %v2608_v20 = vrot.slane %v2605_v19, %v708_v18 }
  0x70   :  { %vm719_vm0 = vcmp.eq.s32.totalorder %v2602_v17, %v2608_v20 }
  0x71   :  { %2153 = vmatmul.mubr.f32.gmra.mxu0 %v135_v21  ;;  %v2522_v21 = vmov 1.0  }
  0x72   :  { %2155 = vmatprep.mubr.f32.mxu0 %v136_v22  ;;  %1745 = vmatprep.mubr.msk.f32.mxu1 %vm719_vm0, %v2522_v21 }
  0x75   :  { %2156 = vmatmul.mubr.f32.gmra.mxu0 %v137_v23 }
  0x76   :  { %2158 = vmatprep.mubr.f32.mxu0 %v138_v24 }
  0x79   :  { %2159 = vmatmul.mubr.f32.gmra.mxu0 %v139_v25 }
  0x7a   :  { %2161 = vmatprep.mubr.f32.mxu0 %v140_v26 }
  0x7d   :  { %2162 = vmatmul.mubr.f32.gmra.mxu0 %v141_v27 }
  0x7e   :  { %2164 = vmatprep.mubr.f32.mxu0 %v142_v28 }
  0x81   :  { %2165 = vmatmul.mubr.f32.gmra.mxu0 %v143_v29 }
  0x82   :  { %2167 = vmatprep.mubr.f32.mxu0 %v144_v30 }
  0x85   :  { %2168 = vmatmul.mubr.f32.gmra.mxu0 %v145_v31 }
  0x86   :  { %2170 = vmatprep.mubr.f32.mxu0 %v146_v32 }
  0x89   :  { %2171 = vmatmul.mubr.f32.gmra.mxu0 %v147_v33 }
  0x8a   :  { %2173 = vmatprep.mubr.f32.mxu0 %v148_v34 }
  0x8d   :  { %2174 = vmatmul.mubr.f32.gmra.mxu0 %v149_v35 }
  0x8e   :  { %2176 = vmatprep.mubr.f32.mxu0 %v150_v36 }
  0x91   :  { %2177 = vmatmul.mubr.f32.gmra.mxu0 %v151_v37 }
  0x92   :  { %2179 = vmatprep.mubr.f32.mxu0 %v152_v38 }
  0x95   :  { %2180 = vmatmul.mubr.f32.gmra.mxu0 %v153_v39 }
  0x96   :  { %2182 = vmatprep.mubr.f32.mxu0 %v154_v40 }
  0x99   :  { %2183 = vmatmul.mubr.f32.gmra.mxu0 %v155_v41 }
  0x9a   :  { %2185 = vmatprep.mubr.f32.mxu0 %v156_v42 }
  0x9d   :  { %2186 = vmatmul.mubr.f32.gmra.mxu0 %v157_v43 }
  0x9e   :  { %2188 = vmatprep.mubr.f32.mxu0 %v158_v44 }
  0xa1   :  { %2189 = vmatmul.mubr.f32.gmra.mxu0 %v159_v45 }
  0xa2   :  { %2191 = vmatprep.mubr.f32.mxu0 %v160_v46 }
  0xa5   :  { %2192 = vmatmul.mubr.f32.gmra.mxu0 %v161_v47 }
  0xa6   :  { %2194 = vmatprep.mubr.f32.mxu0 %v162_v48 }
  0xa9   :  { %2195 = vmatmul.mubr.f32.gmra.mxu0 %v163_v49 }
  0xaa   :  { %2197 = vmatprep.mubr.f32.mxu0 %v164_v50 }
  0xad   :  { %2198 = vmatmul.mubr.f32.gmra.mxu0 %v165_v51 }
  0xae   :  { %2200 = vmatprep.mubr.f32.mxu0 %v166_v52  ;;  %v2646_v52 = vld [vmem:[%s3103_s4] ss:$0 sm:$0xff] }
  0xb1   :  { %2201 = vmatmul.mubr.f32.gmra.mxu0 %v167_v53 }
  0xb2   :  { %2203 = vmatprep.mubr.f32.mxu0 %v168_v54 }
  0xb5   :  { %2204 = vmatmul.mubr.f32.gmra.mxu0 %v169_v55 }
  0xb6   :  { %2206 = vmatprep.mubr.f32.mxu0 %v170_v56 }
  0xb9   :  { %2207 = vmatmul.mubr.f32.gmra.mxu0 %v171_v57 }
  0xba   :  { %2209 = vmatprep.mubr.f32.mxu0 %v172_v58 }
  0xbd   :  { %2210 = vmatmul.mubr.f32.gmra.mxu0 %v173_v59 }
  0xbe   :  { %2212 = vmatprep.mubr.f32.mxu0 %v174_v60 }
  0xc1   :  { %2213 = vmatmul.mubr.f32.gmra.mxu0 %v175_v61 }
  0xc2   :  { %2215 = vmatprep.mubr.f32.mxu0 %v176_v62 }
  0xc5   :  { %2216 = vmatmul.mubr.f32.gmra.mxu0 %v177_v63 }
  0xc6   :  { %2218 = vmatprep.mubr.f32.mxu0 %v178_v0 }
  0xc9   :  { %2219 = vmatmul.mubr.f32.gmra.mxu0 %v179_v1 }
  0xca   :  { %2221 = vmatprep.mubr.f32.mxu0 %v180_v2 }
  0xcd   :  { %2222 = vmatmul.mubr.f32.gmra.mxu0 %v181_v3 }
  0xce   :  { %2224 = vmatprep.mubr.f32.mxu0 %v182_v4 }
  0xd1   :  { %2225 = vmatmul.mubr.f32.gmra.mxu0 %v183_v5 }
  0xd2   :  { %2227 = vmatprep.mubr.f32.mxu0 %v184_v6 }
  0xd5   :  { %2228 = vmatmul.mubr.f32.gmra.mxu0 %v185_v7 }
  0xd6   :  { %2230 = vmatprep.mubr.f32.mxu0 %v186_v8 }
  0xd9   :  { %2231 = vmatmul.mubr.f32.gmra.mxu0 %v187_v9 }
  0xda   :  { %2233 = vmatprep.mubr.f32.mxu0 %v188_v10 }
  0xdd   :  { %2234 = vmatmul.mubr.f32.gmra.mxu0 %v189_v11 }
  0xde   :  { %2236 = vmatprep.mubr.f32.mxu0 %v190_v12 }
  0xe1   :  { %2237 = vmatmul.mubr.f32.gmra.mxu0 %v191_v13 }
  0xe2   :  { %2239 = vmatprep.mubr.f32.mxu0 %v192_v14 }
  0xe5   :  { %2240 = vmatmul.mubr.f32.gmra.mxu0 %v193_v15 }
 0x129   :  { %v2613_v22 = vpop.f32.mrf.mxu0 }
 0x12b   :  { %v2615_v23 = vpop.f32.mrf.mxu0 }
 0x12d   :  { %v2617_v24 = vpop.f32.mrf.mxu0 }
 0x12f   :  { %v2619_v25 = vpop.f32.mrf.mxu0 }
 0x131   :  { %v2621_v26 = vpop.f32.mrf.mxu0 }
 0x133   :  { %v2623_v27 = vpop.f32.mrf.mxu0 }
 0x135   :  { %v2625_v28 = vpop.f32.mrf.mxu0 }
 0x137   :  { %v2627_v29 = vpop.f32.mrf.mxu0 }
 0x139   :  { %v2160_v30 = vpop.f32.mrf.mxu0 }
 0x13a   :  { %v329_v18 = vadd.f32 %v2160_v30, %v2646_v52  ;;  %v319_v30 = vadd.f32 %v2625_v28, %v2646_v52  ;;  %v309_v28 = vadd.f32 %v2621_v26, %v2646_v52 }
 0x13b   :  { %v2629_v31 = vpop.f32.mrf.mxu0 }
 0x13d   :  { %v2163_v32 = vpop.f32.mrf.mxu0 }
 0x13e   :  { %v339_v7 = vadd.f32 %v2163_v32, %v2646_v52 }
 0x13f   :  { %v333_v33 = vpop.f32.mrf.mxu0 }
 0x140   :  { %v334_v12 = vadd.f32 %v2646_v52, %v333_v33  ;;  %v613_v32 = vmax.f32 %v339_v7, 0.0  ;;  %v324_v33 = vadd.f32 %v2646_v52, %v2629_v31  ;;  %v314_v31 = vadd.f32 %v2646_v52, %v2627_v29 }
 0x141   :  { %v2166_v34 = vpop.f32.mrf.mxu0  ;;  %v289_v7 = vadd.f32 %v2613_v22, %v2646_v52 }
 0x142   :  { %v349_v61 = vadd.f32 %v2166_v34, %v2646_v52 }
 0x143   :  { %v343_v35 = vpop.f32.mrf.mxu0 }
 0x144   :  { %v344_v2 = vadd.f32 %v2646_v52, %v343_v35  ;;  %v615_v8 = vmax.f32 %v349_v61, 0.0 }
 0x145   :  { %v2169_v36 = vpop.f32.mrf.mxu0 }
 0x146   :  { %v359_v53 = vadd.f32 %v2169_v36, %v2646_v52  ;;  %v614_v13 = vmax.f32 %v344_v2, 0.0  ;;  %v294_v2 = vadd.f32 %v2646_v52, %v2619_v25 }
 0x147   :  { %v353_v37 = vpop.f32.mrf.mxu0 }
 0x148   :  { %v354_v56 = vadd.f32 %v2646_v52, %v353_v37  ;;  %v617_v62 = vmax.f32 %v359_v53, 0.0  ;;  %v612_v37 = vmax.f32 %v334_v12, 0.0  ;;  %v604_v12 = vmax.f32 %v294_v2, 0.0 }
 0x149   :  { %v2631_v38 = vpop.f32.mrf.mxu0 }
 0x14a   :  { %v616_v3 = vmax.f32 %v354_v56, 0.0 }
 0x14b   :  { %v2633_v39 = vpop.f32.mrf.mxu0 }
 0x14c   :  { %v364_v25 = vadd.f32 %v2646_v52, %v2633_v39 }
 0x14d   :  { %v2635_v40 = vpop.f32.mrf.mxu0 }
 0x14e   :  { %v618_v39 = vmax.f32 %v364_v25, 0.0 }
 0x14f   :  { %v2637_v41 = vpop.f32.mrf.mxu0 }
 0x151   :  { %v2639_v42 = vpop.f32.mrf.mxu0 }
 0x153   :  { %v2641_v43 = vpop.f32.mrf.mxu0 }
 0x155   :  { %v2181_v44 = vpop.f32.mrf.mxu0 }
 0x157   :  { %v393_v45 = vpop.f32.mrf.mxu0 }
 0x159   :  { %v2184_v46 = vpop.f32.mrf.mxu0 }
 0x15a   :  { %v409_v15 = vadd.f32 %v2184_v46, %v2646_v52  ;;  %v399_v46 = vadd.f32 %v2181_v44, %v2646_v52  ;;  %v389_v44 = vadd.f32 %v2639_v42, %v2646_v52  ;;  %v379_v42 = vadd.f32 %v2635_v40, %v2646_v52 }
 0x15b   :  { %v403_v47 = vpop.f32.mrf.mxu0  ;;  %v704_v40 = vsub.s32 0, %v2602_v17 }
 0x15c   :  { %v404_v35 = vadd.f32 %v2646_v52, %v403_v47  ;;  %v394_v47 = vadd.f32 %v2646_v52, %v393_v45  ;;  %v625_v56 = vmax.f32 %v399_v46, 0.0  ;;  %v384_v45 = vadd.f32 %v2646_v52, %v2641_v43 }
 0x15d   :  { %v2187_v48 = vpop.f32.mrf.mxu0  ;;  %v623_v26 = vmax.f32 %v389_v44, 0.0  ;;  %v374_v43 = vadd.f32 %v2646_v52, %v2637_v41  ;;  %v2787_v44 = vadd.s32 48, %v2602_v17 }
 0x15e   :  { %v419_v5 = vadd.f32 %v2187_v48, %v2646_v52  ;;  %v626_v53 = vmax.f32 %v404_v35, 0.0  ;;  %v624_v29 = vmax.f32 %v394_v47, 0.0 }
 0x15f   :  { %v413_v49 = vpop.f32.mrf.mxu0  ;;  %vm743_vm12 = vcmp.eq.s32.totalorder %v2787_v44, %v2608_v20 }
 0x160   :  { %v414_v10 = vadd.f32 %v2646_v52, %v413_v49  ;;  %v629_v16 = vmax.f32 %v419_v5, 0.0  ;;  %v627_v49 = vmax.f32 %v409_v15, 0.0  ;;  %v2728_v15 = vadd.s32 8, %v2602_v17 }
 0x161   :  { %v2190_v50 = vpop.f32.mrf.mxu0 }
 0x162   :  { %v429_v58 = vadd.f32 %v2190_v50, %v2646_v52  ;;  %v628_v36 = vmax.f32 %v414_v10, 0.0  ;;  %v611_v50 = vmax.f32 %v329_v18, 0.0  ;;  %v620_v10 = vmax.f32 %v374_v43, 0.0 }
 0x163   :  { %v423_v51 = vpop.f32.mrf.mxu0  ;;  %vm723_vm2 = vcmp.eq.s32.totalorder %v2728_v15, %v2608_v20 }
 0x164   :  { %v424_v0 = vadd.f32 %v2646_v52, %v423_v51  ;;  %v631_v6 = vmax.f32 %v429_v58, 0.0 }
 0x165   :  { %v2193_v54 = vpop.f32.mrf.mxu0 }
 0x166   :  { %v439_v55 = vadd.f32 %v2193_v54, %v2646_v52  ;;  %v630_v11 = vmax.f32 %v424_v0, 0.0  ;;  %v610_v54 = vmax.f32 %v324_v33, 0.0  ;;  %v607_v0 = vmax.f32 %v309_v28, 0.0 }
 0x167   :  { %v433_v57 = vpop.f32.mrf.mxu0 }
 0x168   :  { %v434_v59 = vadd.f32 %v2646_v52, %v433_v57  ;;  %v633_v60 = vmax.f32 %v439_v55, 0.0  ;;  %v609_v57 = vmax.f32 %v319_v30, 0.0  ;;  %v2761_v30 = vadd.s32 32, %v2602_v17 }
 0x169   :  { %v2654_v63 = vpop.f32.mrf.mxu0 }
 0x16a   :  { %v632_v1 = vmax.f32 %v434_v59, 0.0  ;;  %1890 = vmatprep.subr.mxu1 %v633_v60  ;;  %v304_v59 = vadd.f32 %v2646_v52, %v2623_v27  ;;  %v608_v60 = vmax.f32 %v314_v31, 0.0  ;;  %v622_v27 = vmax.f32 %v384_v45, 0.0 }
 0x16b   :  { %v2658_v4 = vpop.f32.mrf.mxu0  ;;  %1891 = vmatpush3.msra.mxu1 %v617_v62  ;;  %v299_v62 = vadd.f32 %v2617_v24, %v2646_v52  ;;  %v369_v24 = vadd.f32 %v2631_v38, %v2646_v52  ;;  %v2725_v38 = vrot.slane %v2605_v19, %v704_v40  ;;  %vm735_vm8 = vcmp.eq.s32.totalorder %v2761_v30, %v2608_v20 }
 0x16c   :  { %1892 = vmatprep.subr.mxu1 %v632_v1 }
 0x16d   :  { %v2662_v9 = vpop.f32.mrf.mxu0  ;;  %1893 = vmatpush3.msra.mxu1 %v616_v3  ;;  %v606_v3 = vmax.f32 %v304_v59, 0.0  ;;  %v605_v41 = vmax.f32 %v299_v62, 0.0  ;;  %v619_v22 = vmax.f32 %v369_v24, 0.0  ;;  %vm718_vm1 = vcmp.eq.s32.totalorder %v2602_v17, %v2725_v38 }
 0x16e   :  { %1894 = vmatprep.subr.mxu1 %v631_v6  ;;  %v621_v6 = vmax.f32 %v379_v42, 0.0  ;;  %vm722_vm3 = vcmp.eq.s32.totalorder %v2728_v15, %v2725_v38  ;;  %vm734_vm9 = vcmp.eq.s32.totalorder %v2761_v30, %v2725_v38  ;;  %vm742_vm13 = vcmp.eq.s32.totalorder %v2787_v44, %v2725_v38 }
 0x16f   :  { %v2666_v14 = vpop.f32.mrf.mxu0  ;;  %1895 = vmatpush3.msra.mxu1 %v615_v8  ;;  %v2807_v59 = vadd.s32 64, %v2602_v17 }
 0x170   :  { %1896 = vmatprep.subr.mxu1 %v630_v11  ;;  %v284_v11 = vadd.f32 %v2646_v52, %v2615_v23  ;;  %v2735_v23 = vadd.s32 16, %v2602_v17 }
 0x171   :  { %v2670_v34 = vpop.f32.mrf.mxu0  ;;  %1897 = vmatpush3.msra.mxu1 %v614_v13  ;;  %vm751_vm0 = vcmp.eq.s32.totalorder %v2807_v59, %v2608_v20 }
 0x172   :  { %1898 = vmatprep.subr.mxu1 %v629_v16  ;;  %v603_v16 = vmax.f32 %v289_v7, 0.0  ;;  %vm727_vm4 = vcmp.eq.s32.totalorder %v2735_v23, %v2608_v20  ;;  %vm726_vm5 = vcmp.eq.s32.totalorder %v2735_v23, %v2725_v38 }
 0x173   :  { %v2675_v48 = vpop.f32.mrf.mxu0  ;;  %1899 = vmatpush3.msra.mxu1 %v613_v32  ;;  %v602_v32 = vmax.f32 %v284_v11, 0.0 }
 0x174   :  { %1900 = vmatprep.subr.mxu1 %v628_v36 }
 0x175   :  { %v2680_v51 = vpop.f32.mrf.mxu0  ;;  %1901 = vmatpush3.msra.mxu1 %v612_v37  ;;  %v2748_v37 = vadd.s32 24, %v2602_v17 }
 0x176   :  { %1902 = vmatprep.subr.mxu1 %v627_v49 }
 0x177   :  { %v2685_v55 = vpop.f32.mrf.mxu0  ;;  %1903 = vmatpush3.msra.mxu1 %v611_v50  ;;  %vm731_vm6 = vcmp.eq.s32.totalorder %v2748_v37, %v2608_v20  ;;  %vm730_vm7 = vcmp.eq.s32.totalorder %v2748_v37, %v2725_v38 }
 0x178   :  { %1904 = vmatprep.subr.mxu1 %v626_v53  ;;  %v2774_v53 = vadd.s32 40, %v2602_v17 }
 0x179   :  { %v2691_v58 = vpop.f32.mrf.mxu0  ;;  %1905 = vmatpush3.msra.mxu1 %v610_v54 }
 0x17a   :  { %1906 = vmatprep.subr.mxu1 %v625_v56  ;;  %vm739_vm10 = vcmp.eq.s32.totalorder %v2774_v53, %v2608_v20  ;;  %vm738_vm11 = vcmp.eq.s32.totalorder %v2774_v53, %v2725_v38 }
 0x17b   :  { %v2697_v61 = vpop.f32.mrf.mxu0  ;;  %1907 = vmatpush3.msra.mxu1 %v609_v57  ;;  %v2798_v57 = vadd.s32 56, %v2602_v17 }
 0x17c   :  { %1908 = vmatprep.subr.mxu1 %v624_v29 }
 0x17d   :  { %v2703_v1 = vpop.f32.mrf.mxu0  ;;  %1909 = vmatpush3.msra.mxu1 %v608_v60  ;;  %vm747_vm14 = vcmp.eq.s32.totalorder %v2798_v57, %v2608_v20  ;;  %vm746_vm15 = vcmp.eq.s32.totalorder %v2798_v57, %v2725_v38 }
 0x17e   :  { %1910 = vmatprep.subr.mxu1 %v623_v26  ;;  %v2814_v26 = vadd.s32 72, %v2602_v17 }
 0x17f   :  { %v2709_v5 = vpop.f32.mrf.mxu0  ;;  %1911 = vmatpush3.msra.mxu1 %v607_v0 }
 0x180   :  { %1912 = vmatprep.subr.mxu1 %v622_v27 }
 0x181   :  { %v2716_v8 = vpop.f32.mrf.mxu0  ;;  %1913 = vmatpush3.msra.mxu1 %v606_v3 }
 0x182   :  { %1914 = vmatprep.subr.mxu1 %v621_v6  ;;  %v2830_v6 = vadd.s32 80, %v2602_v17  ;;  %v509_v7 = vadd.f32 %v2716_v8, %v2646_v52 }
 0x183   :  { %v2722_v13 = vpop.f32.mrf.mxu0  ;;  %1915 = vmatpush3.msra.mxu1 %v605_v41 }
 0x184   :  { %1916 = vmatprep.subr.mxu1 %v620_v10  ;;  %v504_v11 = vadd.f32 %v2646_v52, %v2722_v13  ;;  %v499_v13 = vadd.f32 %v2703_v1, %v2646_v52 }
 0x185   :  { %v2217_v18 = vpop.f32.mrf.mxu0  ;;  %1917 = vmatpush3.msra.mxu1 %v604_v12 }
 0x186   :  { %1918 = vmatprep.subr.mxu1 %v619_v22  ;;  %v519_v62 = vadd.f32 %v2217_v18, %v2646_v52  ;;  %v647_v18 = vmax.f32 %v509_v7, 0.0 }
 0x187   :  { %v513_v35 = vpop.f32.mrf.mxu0  ;;  %1919 = vmatpush3.msra.mxu1 %v603_v16  ;;  %v2845_v16 = vadd.s32 88, %v2602_v17 }
 0x188   :  { %1920 = vmatprep.subr.mxu1 %v618_v39  ;;  %v514_v27 = vadd.f32 %v2646_v52, %v513_v35  ;;  %v649_v41 = vmax.f32 %v519_v62, 0.0  ;;  %v494_v35 = vadd.f32 %v2646_v52, %v2709_v5  ;;  %v489_v5 = vadd.f32 %v2691_v58, %v2646_v52 }
 0x189   :  { %v2737_v36 = vpop.f32.mrf.mxu0  ;;  %1921 = vmatpush3.msra.mxu1 %v602_v32 }
 0x18a   :  { %1746 = vmatmul.mubr.msk.f32.vlgmr.msra.gmra.mxu1 %vm718_vm1, %v2522_v21  ;;  %vm750_vm1 = vcmp.eq.s32.totalorder %v2807_v59, %v2725_v38  ;;  %v648_v12 = vmax.f32 %v514_v27, 0.0 }
 0x18b   :  { %v2740_v33 = vpop.f32.mrf.mxu0  ;;  %1747 = vmatprep.mubr.msk.f32.mxu1 %vm723_vm2, %v2522_v21  ;;  %vm755_vm2 = vcmp.eq.s32.totalorder %v2814_v26, %v2608_v20 }
 0x18d   :  { %v2750_v46 = vpop.f32.mrf.mxu0 }
 0x18e   :  { %1748 = vmatmul.mubr.msk.f32.gmra.mxu1 %vm722_vm3, %v2522_v21  ;;  %vm754_vm3 = vcmp.eq.s32.totalorder %v2814_v26, %v2725_v38 }
 0x18f   :  { %v2753_v49 = vpop.f32.mrf.mxu0  ;;  %1749 = vmatprep.mubr.msk.f32.mxu1 %vm727_vm4, %v2522_v21  ;;  %vm759_vm4 = vcmp.eq.s32.totalorder %v2830_v6, %v2608_v20 }
 0x191   :  { %v2763_v50 = vpop.f32.mrf.mxu0 }
 0x192   :  { %1750 = vmatmul.mubr.msk.f32.gmra.mxu1 %vm726_vm5, %v2522_v21  ;;  %vm758_vm5 = vcmp.eq.s32.totalorder %v2830_v6, %v2725_v38 }
 0x193   :  { %v2766_v47 = vpop.f32.mrf.mxu0  ;;  %1751 = vmatprep.mubr.msk.f32.mxu1 %vm731_vm6, %v2522_v21  ;;  %vm763_vm6 = vcmp.eq.s32.totalorder %v2845_v16, %v2608_v20 }
 0x195   :  { %v2776_v31 = vpop.f32.mrf.mxu0 }
 0x196   :  { %1752 = vmatmul.mubr.msk.f32.gmra.mxu1 %vm730_vm7, %v2522_v21  ;;  %vm762_vm7 = vcmp.eq.s32.totalorder %v2845_v16, %v2725_v38  ;;  %v559_v58 = vadd.f32 %v2776_v31, %v2646_v52  ;;  %v474_v31 = vadd.f32 %v2646_v52, %v2685_v55  ;;  %v469_v55 = vadd.f32 %v2670_v34, %v2646_v52 }
 0x197   :  { %v2779_v54 = vpop.f32.mrf.mxu0  ;;  %1753 = vmatprep.mubr.msk.f32.mxu1 %vm735_vm8, %v2522_v21  ;;  %v539_v34 = vadd.f32 %v2750_v46, %v2646_v52  ;;  %v454_v46 = vadd.f32 %v2646_v52, %v2666_v14 }
 0x198   :  { %v657_v7 = vmax.f32 %v559_v58, 0.0  ;;  %v1304_v58 = vld [vmem:[#allocation12 + $0x28] sm:$0xff] }
 0x199   :  { %v2232_v56 = vpop.f32.mrf.mxu0 }
 0x19a   :  { %1754 = vmatmul.mubr.msk.f32.gmra.mxu1 %vm734_vm9, %v2522_v21  ;;  %v569_v1 = vadd.f32 %v2232_v56, %v2646_v52  ;;  %v484_v56 = vadd.f32 %v2646_v52, %v2697_v61  ;;  %v479_v61 = vadd.f32 %v2680_v51, %v2646_v52  ;;  %v2890_v51 = vadd.s32 112, %v2602_v17 }
 0x19b   :  { %v2790_v28 = vpop.f32.mrf.mxu0  ;;  %1755 = vmatprep.mubr.msk.f32.mxu1 %vm739_vm10, %v2522_v21 }
 0x19c   :  { %v564_v62 = vadd.f32 %v2646_v52, %v2790_v28  ;;  %v659_v27 = vmax.f32 %v569_v1, 0.0  ;;  %v2877_v28 = vadd.s32 104, %v2602_v17  ;;  %v524_v1 = vadd.f32 %v2646_v52, %v2740_v33 }
 0x19d   :  { %v2235_v45 = vpop.f32.mrf.mxu0 }
 0x19e   :  { %1756 = vmatmul.mubr.msk.f32.gmra.mxu1 %vm738_vm11, %v2522_v21  ;;  %v579_v22 = vadd.f32 %v2235_v45, %v2646_v52  ;;  %v646_v45 = vmax.f32 %v504_v11, 0.0  ;;  %vm771_vm10 = vcmp.eq.s32.totalorder %v2877_v28, %v2608_v20  ;;  %v640_v11 = vmax.f32 %v474_v31, 0.0  ;;  %v1300_v31 = vld [vmem:[#allocation12 + $0x8] sm:$0xff] }
 0x19f   :  { %v573_v29 = vpop.f32.mrf.mxu0  ;;  %1757 = vmatprep.mubr.msk.f32.mxu1 %vm743_vm12, %v2522_v21  ;;  %vm770_vm11 = vcmp.eq.s32.totalorder %v2877_v28, %v2725_v38  ;;  %vm775_vm12 = vcmp.eq.s32.totalorder %v2890_v51, %v2608_v20 }
 0x1a0   :  { %v574_v39 = vadd.f32 %v2646_v52, %v573_v29  ;;  %v2860_v29 = vadd.s32 96, %v2602_v17 }
 0x1a1   :  { %v2238_v60 = vpop.f32.mrf.mxu0 }
 0x1a2   :  { %1758 = vmatmul.mubr.msk.f32.gmra.mxu1 %vm742_vm13, %v2522_v21  ;;  %v589_v3 = vadd.f32 %v2238_v60, %v2646_v52  ;;  %v661_v60 = vmax.f32 %v579_v22, 0.0  ;;  %vm767_vm8 = vcmp.eq.s32.totalorder %v2860_v29, %v2608_v20  ;;  %vm766_vm9 = vcmp.eq.s32.totalorder %v2860_v29, %v2725_v38 }
 0x1a3   :  { %v583_v42 = vpop.f32.mrf.mxu0  ;;  %1759 = vmatprep.mubr.msk.f32.mxu1 %vm747_vm14, %v2522_v21  ;;  %v459_v22 = vadd.f32 %v2662_v9, %v2646_v52  ;;  %vm774_vm13 = vcmp.eq.s32.totalorder %v2890_v51, %v2725_v38  ;;  %v712_v9 = vsub.s32 2, %v2602_v17 }
 0x1a4   :  { %v584_v25 = vadd.f32 %v2646_v52, %v583_v42  ;;  %v663_v8 = vmax.f32 %v589_v3, 0.0  ;;  %v645_v42 = vmax.f32 %v499_v13, 0.0  ;;  %v554_v3 = vadd.f32 %v2646_v52, %v2779_v54 }
 0x1a5   :  { %v2241_v0 = vpop.f32.mrf.mxu0  ;;  %v549_v54 = vadd.f32 %v2763_v50, %v2646_v52  ;;  %v464_v50 = vadd.f32 %v2646_v52, %v2675_v48  ;;  %v716_v48 = vsub.s32 3, %v2602_v17  ;;  %v534_v13 = vadd.f32 %v2646_v52, %v2753_v49 }
 0x1a6   :  { %v599_v43 = vadd.f32 %v2241_v0, %v2646_v52  ;;  %1760 = vmatmul.mubr.msk.f32.gmra.mxu1 %vm746_vm15, %v2522_v21  ;;  %v662_v32 = vmax.f32 %v584_v25, 0.0  ;;  %v660_v0 = vmax.f32 %v574_v39, 0.0  ;;  %v544_v25 = vadd.f32 %v2646_v52, %v2766_v47 }
 0x1a7   :  { %v593_v2 = vpop.f32.mrf.mxu0  ;;  %1761 = vmatprep.mubr.msk.f32.mxu1 %vm751_vm0, %v2522_v21  ;;  %v655_v47 = vmax.f32 %v549_v54, 0.0  ;;  %v638_v39 = vmax.f32 %v464_v50, 0.0  ;;  %v529_v49 = vadd.f32 %v2737_v36, %v2646_v52  ;;  %v2933_v14 = vrot.slane %v2605_v19, %v716_v48  ;;  %v1267_v54 = vld [vmem:[#allocation11] sm:$0xff]  ;;  %v1261_v48 = vld [vmem:[#allocation6 + $0x50] sm:$0xff] }
 0x1a8   :  { %v665_v40 = vmax.f32 %v599_v43, 0.0  ;;  %v594_v24 = vadd.f32 %v2646_v52, %v593_v2  ;;  %v644_v43 = vmax.f32 %v494_v35, 0.0  ;;  %v643_v2 = vmax.f32 %v489_v5, 0.0  ;;  %v1256_v50 = vld [vmem:[#allocation6 + $0x28] sm:$0xff] }
 0x1a9   :  { %v449_v35 = vadd.f32 %v2654_v63, %v2646_v52  ;;  %v444_v36 = vadd.f32 %v2646_v52, %v2658_v4  ;;  %v636_v5 = vmax.f32 %v454_v46, 0.0  ;;  %v651_v63 = vmax.f32 %v529_v49, 0.0  ;;  %v1312_v4 = vld [vmem:[#allocation12 + $0x68] sm:$0xff] }
 0x1aa   :  { %v664_v10 = vmax.f32 %v594_v24, 0.0  ;;  %1762 = vmatmul.mubr.msk.f32.gmra.mxu1 %vm750_vm1, %v2522_v21  ;;  %1970 = vmatprep.subr.mxu1 %v665_v40  ;;  %v658_v40 = vmax.f32 %v564_v62, 0.0  ;;  %v642_v24 = vmax.f32 %v484_v56, 0.0  ;;  %vm721_vm0 = vcmp.eq.s32.totalorder %v2602_v17, %v2933_v14  ;;  %v1306_v62 = vld [vmem:[#allocation12 + $0x38] sm:$0xff]  ;;  %v1305_v56 = vld [vmem:[#allocation12 + $0x30] sm:$0xff] }
 0x1ab   :  { %1971 = vmatpush3.msra.mxu1 %v649_v41  ;;  %1763 = vmatprep.mubr.msk.f32.mxu1 %vm755_vm2, %v2522_v21  ;;  %v641_v41 = vmax.f32 %v479_v61, 0.0  ;;  %v635_v33 = vmax.f32 %v449_v35, 0.0  ;;  %v634_v52 = vmax.f32 %v444_v36, 0.0  ;;  %vm725_vm2 = vcmp.eq.s32.totalorder %v2728_v15, %v2933_v14  ;;  %v1271_v61 = vld [vmem:[#allocation11 + $0x20] sm:$0xff] }
 0x1ac   :  { %1972 = vmatprep.subr.mxu1 %v664_v10  ;;  %v656_v10 = vmax.f32 %v554_v3, 0.0  ;;  %v1301_v3 = vld [vmem:[#allocation12 + $0x10] sm:$0xff] }
 0x1ad   :  { %1973 = vmatpush3.msra.mxu1 %v648_v12  ;;  %v2911_v12 = vadd.s32 120, %v2602_v17 }
 0x1ae   :  { %1764 = vmatmul.mubr.msk.f32.gmra.mxu1 %vm754_vm3, %v2522_v21  ;;  %1974 = vmatprep.subr.mxu1 %v663_v8  ;;  %v639_v8 = vmax.f32 %v469_v55, 0.0  ;;  %v1252_v55 = vld [vmem:[#allocation6 + $0x8] sm:$0xff] }
 0x1af   :  { %1975 = vmatpush3.msra.mxu1 %v647_v18  ;;  %1765 = vmatprep.mubr.msk.f32.mxu1 %vm759_vm4, %v2522_v21  ;;  %v654_v18 = vmax.f32 %v544_v25, 0.0  ;;  %vm779_vm14 = vcmp.eq.s32.totalorder %v2911_v12, %v2608_v20  ;;  %vm778_vm15 = vcmp.eq.s32.totalorder %v2911_v12, %v2725_v38  ;;  %v2946_v20 = vrot.slane %v2605_v19, %v712_v9  ;;  %v1313_v19 = vld [vmem:[#allocation12 + $0x70] sm:$0xff]  ;;  %v1311_v38 = vld [vmem:[#allocation12 + $0x60] sm:$0xff] }
 0x1b0   :  { %1976 = vmatprep.subr.mxu1 %v662_v32  ;;  %v653_v32 = vmax.f32 %v539_v34, 0.0  ;;  %vm729_vm4 = vcmp.eq.s32.totalorder %v2735_v23, %v2933_v14  ;;  %v1254_v25 = vld [vmem:[#allocation6 + $0x18] sm:$0xff] }
 0x1b1   :  { %1977 = vmatpush3.msra.mxu1 %v646_v45  ;;  %v637_v45 = vmax.f32 %v459_v22, 0.0  ;;  %vm720_vm1 = vcmp.eq.s32.totalorder %v2602_v17, %v2946_v20  ;;  %vm724_vm3 = vcmp.eq.s32.totalorder %v2728_v15, %v2946_v20  ;;  %v1314_v17 = vld [vmem:[#allocation12 + $0x78] sm:$0xff] }
 0x1b2   :  { %1766 = vmatmul.mubr.msk.f32.gmra.mxu1 %vm758_vm5, %v2522_v21  ;;  %1978 = vmatprep.subr.mxu1 %v661_v60  ;;  %v652_v60 = vmax.f32 %v534_v13, 0.0  ;;  %vm728_vm5 = vcmp.eq.s32.totalorder %v2735_v23, %v2946_v20  ;;  %v1310_v15 = vld [vmem:[#allocation12 + $0x58] sm:$0xff]  ;;  %v1264_v13 = vld [vmem:[#allocation6 + $0x68] sm:$0xff] }
 0x1b3   :  { %1979 = vmatpush3.msra.mxu1 %v645_v42  ;;  %1767 = vmatprep.mubr.msk.f32.mxu1 %vm763_vm6, %v2522_v21  ;;  %v650_v42 = vmax.f32 %v524_v1, 0.0  ;;  %vm733_vm6 = vcmp.eq.s32.totalorder %v2748_v37, %v2933_v14  ;;  %v1282_v23 = vld [vmem:[#allocation11 + $0x78] sm:$0xff] }
 0x1b4   :  { %1980 = vmatprep.subr.mxu1 %v660_v0  ;;  %2242 = vmatprep.subr.mxu0 %v1314_v17  ;;  %v1274_v0 = vld [vmem:[#allocation11 + $0x38] sm:$0xff] }
 0x1b5   :  { %1981 = vmatpush3.msra.mxu1 %v644_v43  ;;  %2243 = vmatpush3.msra.mxu0 %v1314_v17  ;;  %v1273_v43 = vld [vmem:[#allocation11 + $0x30] sm:$0xff] }
 0x1b6   :  { %1768 = vmatmul.mubr.msk.f32.gmra.mxu1 %vm762_vm7, %v2522_v21  ;;  %1982 = vmatprep.subr.mxu1 %v659_v27  ;;  %vm732_vm7 = vcmp.eq.s32.totalorder %v2748_v37, %v2946_v20  ;;  %v1281_v37 = vld [vmem:[#allocation11 + $0x70] sm:$0xff]  ;;  %v1272_v27 = vld [vmem:[#allocation11 + $0x28] sm:$0xff] }
 0x1b7   :  { %1983 = vmatpush3.msra.mxu1 %v643_v2  ;;  %1769 = vmatprep.mubr.msk.f32.mxu1 %vm767_vm8, %v2522_v21  ;;  %vm737_vm8 = vcmp.eq.s32.totalorder %v2761_v30, %v2933_v14  ;;  %v1270_v2 = vld [vmem:[#allocation11 + $0x18] sm:$0xff] }
 0x1b8   :  { %1984 = vmatprep.subr.mxu1 %v658_v40  ;;  %2244 = vmatprep.subr.mxu0 %v1313_v19  ;;  %v1269_v40 = vld [vmem:[#allocation11 + $0x10] sm:$0xff] }
 0x1b9   :  { %1985 = vmatpush3.msra.mxu1 %v642_v24  ;;  %2245 = vmatpush3.msra.mxu0 %v1313_v19  ;;  %v1268_v24 = vld [vmem:[#allocation11 + $0x8] sm:$0xff]  ;;  %v1258_v34 = vld [vmem:[#allocation6 + $0x38] sm:$0xff] }
 0x1ba   :  { %1770 = vmatmul.mubr.msk.f32.gmra.mxu1 %vm766_vm9, %v2522_v21  ;;  %1986 = vmatprep.subr.mxu1 %v657_v7  ;;  %vm736_vm9 = vcmp.eq.s32.totalorder %v2761_v30, %v2946_v20  ;;  %v1280_v30 = vld [vmem:[#allocation11 + $0x68] sm:$0xff]  ;;  %v1251_v7 = vld [vmem:[#allocation6] sm:$0xff]  ;;  %v1262_v22 = vld [vmem:[#allocation6 + $0x58] sm:$0xff] }
 0x1bb   :  { %1987 = vmatpush3.msra.mxu1 %v641_v41  ;;  %1771 = vmatprep.mubr.msk.f32.mxu1 %vm771_vm10, %v2522_v21  ;;  %vm741_vm10 = vcmp.eq.s32.totalorder %v2774_v53, %v2933_v14  ;;  %v1253_v41 = vld [vmem:[#allocation6 + $0x10] sm:$0xff] }
 0x1bc   :  { %1988 = vmatprep.subr.mxu1 %v656_v10  ;;  %2246 = vmatprep.subr.mxu0 %v1312_v4  ;;  %v1255_v10 = vld [vmem:[#allocation6 + $0x20] sm:$0xff] }
 0x1bd   :  { %1989 = vmatpush3.msra.mxu1 %v640_v11  ;;  %2247 = vmatpush3.msra.mxu0 %v1312_v4  ;;  %v1257_v11 = vld [vmem:[#allocation6 + $0x30] sm:$0xff] }
 0x1be   :  { %1772 = vmatmul.mubr.msk.f32.gmra.mxu1 %vm770_vm11, %v2522_v21  ;;  %1990 = vmatprep.subr.mxu1 %v655_v47  ;;  %vm740_vm11 = vcmp.eq.s32.totalorder %v2774_v53, %v2946_v20  ;;  %v1309_v53 = vld [vmem:[#allocation12 + $0x50] sm:$0xff]  ;;  %v1259_v47 = vld [vmem:[#allocation6 + $0x40] sm:$0xff] }
 0x1bf   :  { %1991 = vmatpush3.msra.mxu1 %v639_v8  ;;  %1773 = vmatprep.mubr.msk.f32.mxu1 %vm775_vm12, %v2522_v21  ;;  %vm745_vm12 = vcmp.eq.s32.totalorder %v2787_v44, %v2933_v14  ;;  %v1263_v8 = vld [vmem:[#allocation6 + $0x60] sm:$0xff] }
 0x1c0   :  { %1992 = vmatprep.subr.mxu1 %v654_v18  ;;  %2248 = vmatprep.subr.mxu0 %v1311_v38  ;;  %v1265_v18 = vld [vmem:[#allocation6 + $0x70] sm:$0xff] }
 0x1c1   :  { %1993 = vmatpush3.msra.mxu1 %v638_v39  ;;  %2249 = vmatpush3.msra.mxu0 %v1311_v38  ;;  %v1266_v39 = vld [vmem:[#allocation6 + $0x78] sm:$0xff] }
 0x1c2   :  { %1774 = vmatmul.mubr.msk.f32.gmra.mxu1 %vm774_vm13, %v2522_v21  ;;  %1994 = vmatprep.subr.mxu1 %v653_v32  ;;  %vm744_vm13 = vcmp.eq.s32.totalorder %v2787_v44, %v2946_v20  ;;  %v1279_v44 = vld [vmem:[#allocation11 + $0x60] sm:$0xff] }
 0x1c3   :  { %1995 = vmatpush3.msra.mxu1 %v637_v45  ;;  %1775 = vmatprep.mubr.msk.f32.mxu1 %vm779_vm14, %v2522_v21  ;;  %vm749_vm14 = vcmp.eq.s32.totalorder %v2798_v57, %v2933_v14 }
 0x1c4   :  { %1996 = vmatprep.subr.mxu1 %v652_v60  ;;  %2250 = vmatprep.subr.mxu0 %v1310_v15 }
 0x1c5   :  { %1997 = vmatpush3.msra.mxu1 %v636_v5  ;;  %2251 = vmatpush3.msra.mxu0 %v1310_v15 }
 0x1c6   :  { %1776 = vmatmul.mubr.msk.f32.gmra.mxu1 %vm778_vm15, %v2522_v21  ;;  %1998 = vmatprep.subr.mxu1 %v651_v63  ;;  %vm748_vm15 = vcmp.eq.s32.totalorder %v2798_v57, %v2946_v20  ;;  %v1278_v57 = vld [vmem:[#allocation11 + $0x58] sm:$0xff] }
 0x1c7   :  { %1999 = vmatpush3.msra.mxu1 %v635_v33  ;;  %1777 = vmatprep.mubr.msk.f32.mxu1 %vm721_vm0, %v2522_v21  ;;  %vm753_vm0 = vcmp.eq.s32.totalorder %v2807_v59, %v2933_v14 }
 0x1c8   :  { %2000 = vmatprep.subr.mxu1 %v650_v42  ;;  %2252 = vmatprep.subr.mxu0 %v1309_v53 }
 0x1c9   :  { %2001 = vmatpush3.msra.mxu1 %v634_v52  ;;  %2253 = vmatpush3.msra.mxu0 %v1309_v53 }
 0x1ca   :  { %1778 = vmatmul.mubr.msk.f32.vlgmr.msra.gmra.mxu1 %vm720_vm1, %v2522_v21  ;;  %vm752_vm1 = vcmp.eq.s32.totalorder %v2807_v59, %v2946_v20  ;;  %2298 = vmatprep.subr.mxu1 %v1282_v23  ;;  %v1277_v59 = vld [vmem:[#allocation11 + $0x50] sm:$0xff] }
 0x1cb   :  { %1779 = vmatprep.mubr.msk.f32.mxu1 %vm725_vm2, %v2522_v21  ;;  %vm757_vm2 = vcmp.eq.s32.totalorder %v2814_v26, %v2933_v14  ;;  %2299 = vmatpush3.msra.mxu1 %v1282_v23 }
 0x1cc   :  { %2300 = vmatprep.subr.mxu1 %v1281_v37 }
 0x1cd   :  { %2301 = vmatpush3.msra.mxu1 %v1281_v37 }
 0x1ce   :  { %1780 = vmatmul.mubr.msk.f32.gmra.mxu1 %vm724_vm3, %v2522_v21  ;;  %vm756_vm3 = vcmp.eq.s32.totalorder %v2814_v26, %v2946_v20  ;;  %2302 = vmatprep.subr.mxu1 %v1280_v30  ;;  %v1308_v26 = vld [vmem:[#allocation12 + $0x48] sm:$0xff] }
 0x1cf   :  { %1781 = vmatprep.mubr.msk.f32.mxu1 %vm729_vm4, %v2522_v21  ;;  %vm761_vm4 = vcmp.eq.s32.totalorder %v2830_v6, %v2933_v14  ;;  %2303 = vmatpush3.msra.mxu1 %v1280_v30 }
 0x1d0   :  { %2304 = vmatprep.subr.mxu1 %v1279_v44  ;;  %2254 = vmatprep.subr.mxu0 %v1308_v26 }
 0x1d1   :  { %2305 = vmatpush3.msra.mxu1 %v1279_v44  ;;  %2255 = vmatpush3.msra.mxu0 %v1308_v26 }
 0x1d2   :  { %1782 = vmatmul.mubr.msk.f32.gmra.mxu1 %vm728_vm5, %v2522_v21  ;;  %vm760_vm5 = vcmp.eq.s32.totalorder %v2830_v6, %v2946_v20  ;;  %2306 = vmatprep.subr.mxu1 %v1278_v57  ;;  %v1276_v6 = vld [vmem:[#allocation11 + $0x48] sm:$0xff] }
 0x1d3   :  { %1783 = vmatprep.mubr.msk.f32.mxu1 %vm733_vm6, %v2522_v21  ;;  %vm765_vm6 = vcmp.eq.s32.totalorder %v2845_v16, %v2933_v14  ;;  %2307 = vmatpush3.msra.mxu1 %v1278_v57 }
 0x1d4   :  { %2308 = vmatprep.subr.mxu1 %v1277_v59 }
 0x1d5   :  { %2309 = vmatpush3.msra.mxu1 %v1277_v59 }
 0x1d6   :  { %1784 = vmatmul.mubr.msk.f32.gmra.mxu1 %vm732_vm7, %v2522_v21  ;;  %vm764_vm7 = vcmp.eq.s32.totalorder %v2845_v16, %v2946_v20  ;;  %v1307_v16 = vld [vmem:[#allocation12 + $0x40] sm:$0xff]  ;;  %2310 = vmatprep.subr.mxu1 %v1276_v6 }
 0x1d7   :  { %1785 = vmatprep.mubr.msk.f32.mxu1 %vm737_vm8, %v2522_v21  ;;  %vm769_vm8 = vcmp.eq.s32.totalorder %v2860_v29, %v2933_v14  ;;  %2311 = vmatpush3.msra.mxu1 %v1276_v6 }
 0x1d8   :  { %2256 = vmatprep.subr.mxu0 %v1307_v16 }
 0x1d9   :  { %2257 = vmatpush3.msra.mxu0 %v1307_v16 }
 0x1da   :  { %1786 = vmatmul.mubr.msk.f32.gmra.mxu1 %vm736_vm9, %v2522_v21  ;;  %vm768_vm9 = vcmp.eq.s32.totalorder %v2860_v29, %v2946_v20  ;;  %v1275_v29 = vld [vmem:[#allocation11 + $0x40] sm:$0xff]  ;;  %2258 = vmatprep.subr.mxu0 %v1306_v62 }
 0x1db   :  { %1787 = vmatprep.mubr.msk.f32.mxu1 %vm741_vm10, %v2522_v21  ;;  %vm773_vm10 = vcmp.eq.s32.totalorder %v2877_v28, %v2933_v14  ;;  %2312 = vmatprep.subr.mxu1 %v1275_v29 }
 0x1dc   :  { %2313 = vmatpush3.msra.mxu1 %v1275_v29  ;;  %2259 = vmatpush3.msra.mxu0 %v1306_v62 }
 0x1dd   :  { %2314 = vmatprep.subr.mxu1 %v1274_v0  ;;  %2260 = vmatprep.subr.mxu0 %v1305_v56 }
 0x1de   :  { %1788 = vmatmul.mubr.msk.f32.gmra.mxu1 %vm740_vm11, %v2522_v21  ;;  %vm772_vm11 = vcmp.eq.s32.totalorder %v2877_v28, %v2946_v20  ;;  %2261 = vmatpush3.msra.mxu0 %v1305_v56  ;;  %v1303_v28 = vld [vmem:[#allocation12 + $0x20] sm:$0xff] }
 0x1df   :  { %1789 = vmatprep.mubr.msk.f32.mxu1 %vm745_vm12, %v2522_v21  ;;  %vm777_vm12 = vcmp.eq.s32.totalorder %v2890_v51, %v2933_v14  ;;  %2315 = vmatpush3.msra.mxu1 %v1274_v0 }
 0x1e0   :  { %2316 = vmatprep.subr.mxu1 %v1273_v43  ;;  %2262 = vmatprep.subr.mxu0 %v1304_v58 }
 0x1e1   :  { %2317 = vmatpush3.msra.mxu1 %v1273_v43  ;;  %2263 = vmatpush3.msra.mxu0 %v1304_v58 }
 0x1e2   :  { %1790 = vmatmul.mubr.msk.f32.gmra.mxu1 %vm744_vm13, %v2522_v21  ;;  %vm776_vm13 = vcmp.eq.s32.totalorder %v2890_v51, %v2946_v20  ;;  %2318 = vmatprep.subr.mxu1 %v1272_v27  ;;  %v1299_v51 = vld [vmem:[#allocation12] sm:$0xff] }
 0x1e3   :  { %1791 = vmatprep.mubr.msk.f32.mxu1 %vm749_vm14, %v2522_v21  ;;  %vm781_vm14 = vcmp.eq.s32.totalorder %v2911_v12, %v2933_v14  ;;  %2319 = vmatpush3.msra.mxu1 %v1272_v27 }
 0x1e4   :  { %2264 = vmatprep.subr.mxu0 %v1303_v28  ;;  %2320 = vmatprep.subr.mxu1 %v1271_v61 }
 0x1e5   :  { %2265 = vmatpush3.msra.mxu0 %v1303_v28  ;;  %2321 = vmatpush3.msra.mxu1 %v1271_v61 }
 0x1e6   :  { %1792 = vmatmul.mubr.msk.f32.gmra.mxu1 %vm748_vm15, %v2522_v21  ;;  %vm780_vm15 = vcmp.eq.s32.totalorder %v2911_v12, %v2946_v20  ;;  %2322 = vmatprep.subr.mxu1 %v1270_v2  ;;  %v1260_v12 = vld [vmem:[#allocation6 + $0x48] sm:$0xff] }
 0x1e7   :  { %1793 = vmatprep.mubr.msk.f32.mxu1 %vm753_vm0, %v2522_v21  ;;  %2323 = vmatpush3.msra.mxu1 %v1270_v2 }
 0x1e8   :  { %2324 = vmatprep.subr.mxu1 %v1269_v40 }
 0x1e9   :  { %2325 = vmatpush3.msra.mxu1 %v1269_v40 }
 0x1ea   :  { %1794 = vmatmul.mubr.msk.f32.gmra.mxu1 %vm752_vm1, %v2522_v21  ;;  %2326 = vmatprep.subr.mxu1 %v1268_v24 }
 0x1eb   :  { %1795 = vmatprep.mubr.msk.f32.mxu1 %vm757_vm2, %v2522_v21  ;;  %2327 = vmatpush3.msra.mxu1 %v1268_v24 }
 0x1ec   :  { %2328 = vmatprep.subr.mxu1 %v1267_v54 }
 0x1ed   :  { %2329 = vmatpush3.msra.mxu1 %v1267_v54 }
 0x1ee   :  { %1796 = vmatmul.mubr.msk.f32.gmra.mxu1 %vm756_vm3, %v2522_v21 }
 0x1ef   :  { %1797 = vmatprep.mubr.msk.f32.mxu1 %vm761_vm4, %v2522_v21 }
 0x1f2   :  { %1798 = vmatmul.mubr.msk.f32.gmra.mxu1 %vm760_vm5, %v2522_v21 }
 0x1f3   :  { %1799 = vmatprep.mubr.msk.f32.mxu1 %vm765_vm6, %v2522_v21 }
 0x1f6   :  { %1800 = vmatmul.mubr.msk.f32.gmra.mxu1 %vm764_vm7, %v2522_v21 }
 0x1f7   :  { %1801 = vmatprep.mubr.msk.f32.mxu1 %vm769_vm8, %v2522_v21 }
 0x1fa   :  { %1802 = vmatmul.mubr.msk.f32.gmra.mxu1 %vm768_vm9, %v2522_v21 }
 0x1fb   :  { %1803 = vmatprep.mubr.msk.f32.mxu1 %vm773_vm10, %v2522_v21 }
 0x1fe   :  { %1804 = vmatmul.mubr.msk.f32.gmra.mxu1 %vm772_vm11, %v2522_v21 }
 0x1ff   :  { %1805 = vmatprep.mubr.msk.f32.mxu1 %vm777_vm12, %v2522_v21 }
 0x202   :  { %1806 = vmatmul.mubr.msk.f32.gmra.mxu1 %vm776_vm13, %v2522_v21 }
 0x203   :  { %1807 = vmatprep.mubr.msk.f32.mxu1 %vm781_vm14, %v2522_v21 }
 0x206   :  { %1808 = vmatmul.mubr.msk.f32.gmra.mxu1 %vm780_vm15, %v2522_v21  ;;  %v1302_v21 = vld [vmem:[#allocation12 + $0x18] sm:$0xff] }
 0x207   :  { %2266 = vmatprep.subr.mxu0 %v1302_v21  ;;  %2330 = vmatprep.mubr.f32.mxu1 %v1251_v7 }
 0x208   :  { %2267 = vmatpush3.msra.mxu0 %v1302_v21 }
 0x209   :  { %2268 = vmatprep.subr.mxu0 %v1301_v3 }
 0x20a   :  { %2269 = vmatpush3.msra.mxu0 %v1301_v3  ;;  %2331 = vmatmul.mubr.f32.vlgmr.msra.gmra.mxu1 %v1252_v55 }
 0x20b   :  { %2270 = vmatprep.subr.mxu0 %v1300_v31  ;;  %2333 = vmatprep.mubr.f32.mxu1 %v1253_v41 }
 0x20c   :  { %2271 = vmatpush3.msra.mxu0 %v1300_v31 }
 0x20d   :  { %2272 = vmatprep.subr.mxu0 %v1299_v51 }
 0x20e   :  { %2273 = vmatpush3.msra.mxu0 %v1299_v51  ;;  %2334 = vmatmul.mubr.f32.gmra.mxu1 %v1254_v25 }
 0x20f   :  { %2336 = vmatprep.mubr.f32.mxu1 %v1255_v10 }
 0x212   :  { %2337 = vmatmul.mubr.f32.gmra.mxu1 %v1256_v50 }
 0x213   :  { %2339 = vmatprep.mubr.f32.mxu1 %v1257_v11 }
 0x216   :  { %2340 = vmatmul.mubr.f32.gmra.mxu1 %v1258_v34 }
 0x217   :  { %2342 = vmatprep.mubr.f32.mxu1 %v1259_v47 }
 0x21a   :  { %2343 = vmatmul.mubr.f32.gmra.mxu1 %v1260_v12 }
 0x21b   :  { %2345 = vmatprep.mubr.f32.mxu1 %v1261_v48 }
 0x21e   :  { %2346 = vmatmul.mubr.f32.gmra.mxu1 %v1262_v22 }
 0x21f   :  { %2348 = vmatprep.mubr.f32.mxu1 %v1263_v8 }
 0x222   :  { %2349 = vmatmul.mubr.f32.gmra.mxu1 %v1264_v13 }
 0x223   :  { %2351 = vmatprep.mubr.f32.mxu1 %v1265_v18 }
 0x226   :  { %2352 = vmatmul.mubr.f32.gmra.mxu1 %v1266_v39 }
 0x24a   :  { %v1922_v46 = vpop.f32.mrf.mxu1 }
 0x24c   :  { %v1923_v9 = vpop.f32.mrf.mxu1 }
 0x24d   :  { %v1924_v49 = vadd.f32 %v1923_v9, %v1922_v46 }
 0x24e   :  { %v1925_v32 = vpop.f32.mrf.mxu1 }
 0x250   :  { %v1926_v14 = vpop.f32.mrf.mxu1 }
 0x251   :  { %v1927_v35 = vadd.f32 %v1926_v14, %v1925_v32 }
 0x252   :  { %v1928_v45 = vpop.f32.mrf.mxu1 }
 0x254   :  { %v1929_v1 = vpop.f32.mrf.mxu1 }
 0x255   :  { %v1930_v60 = vadd.f32 %v1929_v1, %v1928_v45 }
 0x256   :  { %v1931_v36 = vpop.f32.mrf.mxu1 }
 0x258   :  { %v1932_v5 = vpop.f32.mrf.mxu1 }
 0x259   :  { %v1933_v20 = vadd.f32 %v1932_v5, %v1931_v36 }
 0x25a   :  { %v1934_v63 = vpop.f32.mrf.mxu1 }
 0x25c   :  { %v1935_v33 = vpop.f32.mrf.mxu1 }
 0x25d   :  { %v1936_v42 = vadd.f32 %v1935_v33, %v1934_v63 }
 0x25e   :  { %v1937_v52 = vpop.f32.mrf.mxu1 }
 0x260   :  { %v1938_v17 = vpop.f32.mrf.mxu1 }
 0x261   :  { %v1939_v19 = vadd.f32 %v1938_v17, %v1937_v52 }
 0x262   :  { %v1940_v4 = vpop.f32.mrf.mxu1 }
 0x264   :  { %v1941_v38 = vpop.f32.mrf.mxu1 }
 0x265   :  { %v1942_v15 = vadd.f32 %v1941_v38, %v1940_v4 }
 0x266   :  { %v1943_v23 = vpop.f32.mrf.mxu1 }
 0x268   :  { %v1944_v37 = vpop.f32.mrf.mxu1 }
 0x269   :  { %v3045_v30 = vadd.f32 %v1944_v37, %v1943_v23 }
 0x26a   :  { %v1946_v53 = vpop.f32.mrf.mxu1 }
 0x26c   :  { %v1947_v44 = vpop.f32.mrf.mxu1 }
 0x26d   :  { %v3047_v57 = vadd.f32 %v1947_v44, %v1946_v53 }
 0x26e   :  { %v1949_v59 = vpop.f32.mrf.mxu1 }
 0x270   :  { %v1950_v26 = vpop.f32.mrf.mxu1 }
 0x271   :  { %v3049_v6 = vadd.f32 %v1950_v26, %v1949_v59 }
 0x272   :  { %v1952_v16 = vpop.f32.mrf.mxu1 }
 0x274   :  { %v1953_v29 = vpop.f32.mrf.mxu1 }
 0x275   :  { %v3051_v62 = vadd.f32 %v1953_v29, %v1952_v16 }
 0x276   :  { %v1955_v0 = vpop.f32.mrf.mxu1 }
 0x278   :  { %v1956_v56 = vpop.f32.mrf.mxu1 }
 0x279   :  { %v3053_v43 = vadd.f32 %v1956_v56, %v1955_v0 }
 0x27a   :  { %v1958_v58 = vpop.f32.mrf.mxu1 }
 0x27c   :  { %v1959_v27 = vpop.f32.mrf.mxu1 }
 0x27d   :  { %v3055_v28 = vadd.f32 %v1959_v27, %v1958_v58 }
 0x27e   :  { %v1961_v61 = vpop.f32.mrf.mxu1 }
 0x280   :  { %v1962_v21 = vpop.f32.mrf.mxu1 }
 0x281   :  { %v3057_v2 = vadd.f32 %v1962_v21, %v1961_v61 }
 0x282   :  { %v1964_v3 = vpop.f32.mrf.mxu1 }
 0x284   :  { %v1965_v40 = vpop.f32.mrf.mxu1 }
 0x285   :  { %v3059_v31 = vadd.f32 %v1965_v40, %v1964_v3 }
 0x286   :  { %v1967_v24 = vpop.f32.mrf.mxu1 }
 0x288   :  { %v1968_v51 = vpop.f32.mrf.mxu1 }
 0x289   :  { %v3061_v54 = vadd.f32 %v1968_v51, %v1967_v24 }
 0x28a   :  { %v2002_v7 = vpop.f32.mrf.mxu1 }
 0x28c   :  { %v2003_v55 = vpop.f32.mrf.mxu1 }
 0x28d   :  { %v2004_v41 = vadd.f32 %v2003_v55, %v2002_v7 }
 0x28e   :  { %v2005_v25 = vpop.f32.mrf.mxu1 }
 0x28f   :  { %v1138_v10 = vadd.f32 %v2004_v41, %v1924_v49 }
 0x290   :  { %v2006_v50 = vpop.f32.mrf.mxu1 }
 0x291   :  { %v2007_v11 = vadd.f32 %v2006_v50, %v2005_v25  ;;  %2274 = vmatprep.mubr.f32.mxu0 %v1138_v10  ;;  %v3075_v50 = vld [vmem:[%s3106_s7] ss:$0 sm:$0xff]  ;;  %s2523_s7 = smov [#allocation14]  }
 0x292   :  { %v2008_v34 = vpop.f32.mrf.mxu1  ;;  %s1665_s14 = sshll.u32 %s2523_s7, 4  ;;  %s1666_s14 = int_to_ptr.vmem [resolvable:$true] %s1665_s14 }
 0x293   :  { %v1143_v47 = vadd.f32 %v2007_v11, %v1927_v35  ;;  %s2484_s15 = scalar_lea.vmem %s1666_s14, 2048  ;;  %p2489_p3 = scmp.lt.s32.totalorder %s1666_s14, %s1666_s14 }
 0x294   :  { %v2009_v12 = vpop.f32.mrf.mxu1  ;;  %p2485_p2 = scmp.ne.s32.totalorder %s1666_s14, %s2484_s15  ;;  %p2490_p4 = scmp.lt.s32.totalorder %s2484_s15, %s2484_s15 }
 0x295   :  { %v2010_v48 = vadd.f32 %v2009_v12, %v2008_v34  ;;  %2275 = vmatmul.mubr.f32.vlgmr.msra.gmra.mxu0 %v1143_v47 }
 0x296   :  { %v2011_v22 = vpop.f32.mrf.mxu1  ;;  %p2491_p5 = por %p2490_p4, %p2489_p3 }
 0x297   :  { %v1148_v8 = vadd.f32 %v2010_v48, %v1930_v60 }
 0x298   :  { %v2012_v13 = vpop.f32.mrf.mxu1  ;;  %p2492_p6 = pnand %p2491_p5, %p2485_p2 }
 0x299   :  { %v2013_v18 = vadd.f32 %v2012_v13, %v2011_v22  ;;  %2277 = vmatprep.mubr.f32.mxu0 %v1148_v8 }
 0x29a   :  { %v2014_v46 = vpop.f32.mrf.mxu1 }
 0x29b   :  { %v1153_v39 = vadd.f32 %v2013_v18, %v1933_v20 }
 0x29c   :  { %v2015_v9 = vpop.f32.mrf.mxu1 }
 0x29d   :  { %v2016_v32 = vadd.f32 %v2015_v9, %v2014_v46  ;;  %2278 = vmatmul.mubr.f32.gmra.mxu0 %v1153_v39 }
 0x29e   :  { %v2017_v14 = vpop.f32.mrf.mxu1 }
 0x29f   :  { %v1158_v49 = vadd.f32 %v2016_v32, %v1936_v42 }
 0x2a0   :  { %v2018_v45 = vpop.f32.mrf.mxu1 }
 0x2a1   :  { %v2019_v1 = vadd.f32 %v2018_v45, %v2017_v14  ;;  %2280 = vmatprep.mubr.f32.mxu0 %v1158_v49 }
 0x2a2   :  { %v2020_v36 = vpop.f32.mrf.mxu1 }
 0x2a3   :  { %v1163_v35 = vadd.f32 %v2019_v1, %v1939_v19 }
 0x2a4   :  { %v2021_v5 = vpop.f32.mrf.mxu1 }
 0x2a5   :  { %v2022_v63 = vadd.f32 %v2021_v5, %v2020_v36  ;;  %2281 = vmatmul.mubr.f32.gmra.mxu0 %v1163_v35 }
 0x2a6   :  { %v2023_v33 = vpop.f32.mrf.mxu1 }
 0x2a7   :  { %v1168_v60 = vadd.f32 %v2022_v63, %v1942_v15 }
 0x2a8   :  { %v2024_v52 = vpop.f32.mrf.mxu1 }
 0x2a9   :  { %v2025_v17 = vadd.f32 %v2024_v52, %v2023_v33  ;;  %2283 = vmatprep.mubr.f32.mxu0 %v1168_v60 }
 0x2aa   :  { %v2026_v4 = vpop.f32.mrf.mxu1 }
 0x2ab   :  { %v1173_v20 = vadd.f32 %v2025_v17, %v3045_v30 }
 0x2ac   :  { %v2027_v38 = vpop.f32.mrf.mxu1 }
 0x2ad   :  { %v2028_v23 = vadd.f32 %v2027_v38, %v2026_v4  ;;  %2284 = vmatmul.mubr.f32.gmra.mxu0 %v1173_v20 }
 0x2ae   :  { %v2029_v42 = vpop.f32.mrf.mxu1 }
 0x2af   :  { %v1178_v37 = vadd.f32 %v2028_v23, %v3047_v57 }
 0x2b0   :  { %v2030_v53 = vpop.f32.mrf.mxu1 }
 0x2b1   :  { %v2031_v44 = vadd.f32 %v2030_v53, %v2029_v42  ;;  %2286 = vmatprep.mubr.f32.mxu0 %v1178_v37 }
 0x2b2   :  { %v2032_v19 = vpop.f32.mrf.mxu1 }
 0x2b3   :  { %v1183_v59 = vadd.f32 %v2031_v44, %v3049_v6 }
 0x2b4   :  { %v2033_v26 = vpop.f32.mrf.mxu1 }
 0x2b5   :  { %v2034_v15 = vadd.f32 %v2033_v26, %v2032_v19  ;;  %2287 = vmatmul.mubr.f32.gmra.mxu0 %v1183_v59 }
 0x2b6   :  { %v2035_v16 = vpop.f32.mrf.mxu1 }
 0x2b7   :  { %v1188_v29 = vadd.f32 %v2034_v15, %v3051_v62 }
 0x2b8   :  { %v2036_v0 = vpop.f32.mrf.mxu1 }
 0x2b9   :  { %v2037_v30 = vadd.f32 %v2036_v0, %v2035_v16  ;;  %2289 = vmatprep.mubr.f32.mxu0 %v1188_v29 }
 0x2ba   :  { %v2038_v56 = vpop.f32.mrf.mxu1 }
 0x2bb   :  { %v1193_v58 = vadd.f32 %v2037_v30, %v3053_v43 }
 0x2bc   :  { %v2039_v27 = vpop.f32.mrf.mxu1 }
 0x2bd   :  { %v2040_v57 = vadd.f32 %v2039_v27, %v2038_v56  ;;  %2290 = vmatmul.mubr.f32.gmra.mxu0 %v1193_v58 }
 0x2be   :  { %v2041_v61 = vpop.f32.mrf.mxu1 }
 0x2bf   :  { %v1198_v21 = vadd.f32 %v2040_v57, %v3055_v28 }
 0x2c0   :  { %v2042_v3 = vpop.f32.mrf.mxu1 }
 0x2c1   :  { %v2043_v6 = vadd.f32 %v2042_v3, %v2041_v61  ;;  %2292 = vmatprep.mubr.f32.mxu0 %v1198_v21 }
 0x2c2   :  { %v2044_v40 = vpop.f32.mrf.mxu1 }
 0x2c3   :  { %v1203_v24 = vadd.f32 %v2043_v6, %v3057_v2 }
 0x2c4   :  { %v2045_v51 = vpop.f32.mrf.mxu1 }
 0x2c5   :  { %v2046_v62 = vadd.f32 %v2045_v51, %v2044_v40  ;;  %2293 = vmatmul.mubr.f32.gmra.mxu0 %v1203_v24 }
 0x2c6   :  { %v2047_v7 = vpop.f32.mrf.mxu1 }
 0x2c7   :  { %v1208_v55 = vadd.f32 %v2046_v62, %v3059_v31 }
 0x2c8   :  { %v2048_v41 = vpop.f32.mrf.mxu1 }
 0x2c9   :  { %v2049_v43 = vadd.f32 %v2048_v41, %v2047_v7  ;;  %2295 = vmatprep.mubr.f32.mxu0 %v1208_v55 }
 0x2ca   :  { %v2332_v10 = vpop.f32.mrf.mxu1 }
 0x2cb   :  { %v1213_v25 = vadd.f32 %v2049_v43, %v3061_v54 }
 0x2cc   :  { %v1526_v2 = vpop.f32.mrf.mxu1 }
 0x2cd   :  { %2296 = vmatmul.mubr.f32.gmra.mxu0 %v1213_v25 }
 0x2ce   :  { %v2335_v31 = vpop.f32.mrf.mxu1 }
 0x2d0   :  { %v1536_v13 = vpop.f32.mrf.mxu1 }
 0x2d2   :  { %v2338_v32 = vpop.f32.mrf.mxu1 }
 0x2d4   :  { %v1546_v36 = vpop.f32.mrf.mxu1 }
 0x2d6   :  { %v2341_v60 = vpop.f32.mrf.mxu1 }
 0x2d8   :  { %v1556_v38 = vpop.f32.mrf.mxu1 }
 0x2da   :  { %v2344_v44 = vpop.f32.mrf.mxu1 }
 0x2dc   :  { %v1566_v16 = vpop.f32.mrf.mxu1 }
 0x2de   :  { %v2347_v58 = vpop.f32.mrf.mxu1 }
 0x2e0   :  { %v1576_v3 = vpop.f32.mrf.mxu1 }
 0x2e2   :  { %v2350_v62 = vpop.f32.mrf.mxu1 }
 0x2e4   :  { %v1586_v25 = vpop.f32.mrf.mxu1 }
 0x355   :  { %v2276_v28 = vpop.f32.mrf.mxu0 }
 0x356   :  { %v1532_v11 = vadd.f32 %v2332_v10, %v2276_v28 }
 0x357   :  { %v1381_v34 = vpop.f32.mrf.mxu0 }
 0x358   :  { %v1613_v47 = vadd.f32 %v3075_v50, %v1532_v11  ;;  %v1527_v12 = vadd.f32 %v1526_v2, %v1381_v34 }
 0x35a   :  { %v1629_v48 = vmax.f32 %v1613_v47, 0.0  ;;  %v1612_v22 = vadd.f32 %v3075_v50, %v1527_v12  ;;  %v2353_v12 = vpop.f32.mrf.mxu1 }
 0x35c   :  { %1645 = vst [vmem:[#allocation14 + $0x8] sm:$0xff] %v1629_v48  ;;  %v1628_v54 = vmax.f32 %v1612_v22, 0.0 }
 0x35d   :  { %v2279_v8 = vpop.f32.mrf.mxu0 }
 0x35e   :  { %1644 = vst [vmem:[#allocation14] sm:$0xff] %v1628_v54  ;;  %v1542_v18 = vadd.f32 %v2335_v31, %v2279_v8  ;;  %v1596_v8 = vpop.f32.mrf.mxu1 }
 0x35f   :  { %v1391_v46 = vpop.f32.mrf.mxu0 }
 0x360   :  { %v1615_v39 = vadd.f32 %v3075_v50, %v1542_v18  ;;  %v1537_v9 = vadd.f32 %v1536_v13, %v1391_v46 }
 0x362   :  { %v1631_v14 = vmax.f32 %v1615_v39, 0.0  ;;  %v1614_v49 = vadd.f32 %v3075_v50, %v1537_v9 }
 0x364   :  { %1647 = vst [vmem:[#allocation14 + $0x18] sm:$0xff] %v1631_v14  ;;  %v1630_v45 = vmax.f32 %v1614_v49, 0.0 }
 0x365   :  { %v2282_v1 = vpop.f32.mrf.mxu0 }
 0x366   :  { %1646 = vst [vmem:[#allocation14 + $0x10] sm:$0xff] %v1630_v45  ;;  %v1552_v35 = vadd.f32 %v2338_v32, %v2282_v1 }
 0x367   :  { %v1401_v5 = vpop.f32.mrf.mxu0 }
 0x368   :  { %v1617_v63 = vadd.f32 %v3075_v50, %v1552_v35  ;;  %v1547_v33 = vadd.f32 %v1546_v36, %v1401_v5 }
 0x36a   :  { %v1633_v52 = vmax.f32 %v1617_v63, 0.0  ;;  %v1616_v17 = vadd.f32 %v3075_v50, %v1547_v33 }
 0x36c   :  { %1649 = vst [vmem:[#allocation14 + $0x28] sm:$0xff] %v1633_v52  ;;  %v1632_v4 = vmax.f32 %v1616_v17, 0.0 }
 0x36d   :  { %v2285_v20 = vpop.f32.mrf.mxu0 }
 0x36e   :  { %1648 = vst [vmem:[#allocation14 + $0x20] sm:$0xff] %v1632_v4  ;;  %v1562_v23 = vadd.f32 %v2341_v60, %v2285_v20 }
 0x36f   :  { %v1411_v42 = vpop.f32.mrf.mxu0 }
 0x370   :  { %v1619_v37 = vadd.f32 %v3075_v50, %v1562_v23  ;;  %v1557_v53 = vadd.f32 %v1556_v38, %v1411_v42 }
 0x372   :  { %v1635_v19 = vmax.f32 %v1619_v37, 0.0  ;;  %v1618_v59 = vadd.f32 %v3075_v50, %v1557_v53 }
 0x374   :  { %1651 = vst [vmem:[#allocation14 + $0x38] sm:$0xff] %v1635_v19  ;;  %v1634_v26 = vmax.f32 %v1618_v59, 0.0 }
 0x375   :  { %v2288_v15 = vpop.f32.mrf.mxu0 }
 0x376   :  { %1650 = vst [vmem:[#allocation14 + $0x30] sm:$0xff] %v1634_v26  ;;  %v1572_v29 = vadd.f32 %v2344_v44, %v2288_v15 }
 0x377   :  { %v1421_v0 = vpop.f32.mrf.mxu0 }
 0x378   :  { %v1621_v30 = vadd.f32 %v3075_v50, %v1572_v29  ;;  %v1567_v56 = vadd.f32 %v1566_v16, %v1421_v0 }
 0x37a   :  { %v1637_v27 = vmax.f32 %v1621_v30, 0.0  ;;  %v1620_v57 = vadd.f32 %v3075_v50, %v1567_v56 }
 0x37c   :  { %1653 = vst [vmem:[#allocation14 + $0x48] sm:$0xff] %v1637_v27  ;;  %v1636_v61 = vmax.f32 %v1620_v57, 0.0 }
 0x37d   :  { %v2291_v21 = vpop.f32.mrf.mxu0 }
 0x37e   :  { %1652 = vst [vmem:[#allocation14 + $0x40] sm:$0xff] %v1636_v61  ;;  %v1582_v6 = vadd.f32 %v2347_v58, %v2291_v21 }
 0x37f   :  { %v1431_v40 = vpop.f32.mrf.mxu0 }
 0x380   :  { %v1623_v24 = vadd.f32 %v3075_v50, %v1582_v6  ;;  %v1577_v51 = vadd.f32 %v1576_v3, %v1431_v40 }
 0x382   :  { %v1639_v7 = vmax.f32 %v1623_v24, 0.0  ;;  %v1622_v55 = vadd.f32 %v3075_v50, %v1577_v51 }
 0x384   :  { %1655 = vst [vmem:[#allocation14 + $0x58] sm:$0xff] %v1639_v7  ;;  %v1638_v41 = vmax.f32 %v1622_v55, 0.0 }
 0x385   :  { %v2294_v43 = vpop.f32.mrf.mxu0 }
 0x386   :  { %1654 = vst [vmem:[#allocation14 + $0x50] sm:$0xff] %v1638_v41  ;;  %v1592_v10 = vadd.f32 %v2350_v62, %v2294_v43 }
 0x387   :  { %v1441_v28 = vpop.f32.mrf.mxu0 }
 0x388   :  { %v1625_v2 = vadd.f32 %v3075_v50, %v1592_v10  ;;  %v1587_v11 = vadd.f32 %v1586_v25, %v1441_v28 }
 0x38a   :  { %v1641_v34 = vmax.f32 %v1625_v2, 0.0  ;;  %v1624_v47 = vadd.f32 %v3075_v50, %v1587_v11 }
 0x38c   :  { %1657 = vst [vmem:[#allocation14 + $0x68] sm:$0xff] %v1641_v34  ;;  %v1640_v31 = vmax.f32 %v1624_v47, 0.0 }
 0x38d   :  { %v2297_v48 = vpop.f32.mrf.mxu0 }
 0x38e   :  { %1656 = vst [vmem:[#allocation14 + $0x60] sm:$0xff] %v1640_v31  ;;  %v1602_v22 = vadd.f32 %v2353_v12, %v2297_v48 }
 0x38f   :  { %v1451_v54 = vpop.f32.mrf.mxu0 }
 0x390   :  { %v1627_v13 = vadd.f32 %v3075_v50, %v1602_v22  ;;  %v1597_v18 = vadd.f32 %v1596_v8, %v1451_v54 }
 0x392   :  { %v1643_v46 = vmax.f32 %v1627_v13, 0.0  ;;  %v1626_v39 = vadd.f32 %v3075_v50, %v1597_v18 }
 0x394   :  { %1659 = vst [vmem:[#allocation14 + $0x78] sm:$0xff] %v1643_v46  ;;  %v1642_v9 = vmax.f32 %v1626_v39, 0.0 }
 0x396   :  { %1658 = vst [vmem:[#allocation14 + $0x70] sm:$0xff] %v1642_v9 }
 0x397   :  { %2495 = shalt.err (!%p2492_p6)
}
 0x398   :  { %1671 = dma.vmem_to_hbm [thread:$0]  %s1666_s14, 2048, %s3107_s8, [#allocation5], %s2516_s10, %s2516_s10, %s2517_s11  }
 0x399   :  { %2512 = dma.done.wait [#allocation5], 2048  }
 0x39a   :  { %2513 = vsyncadd [#allocation5], 4294965248 }
 0x39b   :  { %1675 = vsyncpa [#allocation4], 1 }
 0x39c   :  { %1676 = vsyncpa [#allocation7], 1 }
 0x39d   :  { %1677 = vsyncpa [#allocation10], 1 }
 0x39e   :  { %1678 = vsyncpa [#allocation13], 1 }
 0x39f   :  { %1679 = vsyncpa [#allocation5], 1 }

</bundles_post_ra>
